<compile_context>
chip_gen: v7x
topology: tpu7x:2x2x1
jax: 0.10.0
libtpu: 0.0.40
codegen_flags: <defaults>
</compile_context>

<pallas_src>
import functools
import math

import jax
import jax.numpy as jnp
from jax.experimental import pallas as pl
from jax.experimental.pallas import tpu as pltpu

EPS = 1e-12  # torch.nn.functional.normalize default eps


# --------------------------------------------------------------------------
# Generation-aware VMEM budgets
# --------------------------------------------------------------------------
def _vmem_capacity_bytes():
    try:
        cap = int(getattr(pltpu.get_tpu_info(), "vmem_capacity_bytes", 0))
        if cap > 0:
            return cap
    except Exception:
        pass
    return 64 << 20  # conservative default (v7x per-TensorCore VMEM)


_VMEM_CAP = _vmem_capacity_bytes()
# 128 MiB parts (v5e/v6e): keep medium-N graphs on the single fused kernel
# (one adj pass, no intermediate HBM traffic).  64 MiB parts (v7x): hand off
# earlier to the tiled path whose "parallel" row axis shards over both TCs.
_FUSED_VMEM_BUDGET = min(int(0.62 * _VMEM_CAP), 96 << 20)
if _VMEM_CAP <= (64 << 20):
    _FUSED_VMEM_BUDGET = min(_FUSED_VMEM_BUDGET, 24 << 20)
_FUSED_VMEM_LIMIT = min(_VMEM_CAP - (8 << 20), _FUSED_VMEM_BUDGET + (24 << 20))
_TILED_VMEM_LIMIT = 32 << 20


def _fused_fits(n, d):
    # Resident in the fused kernel: adj/x (bf16), init/s/h1 (f32), bf16 casts of
    # s and h1, gathered rows + weights, plus headroom for compiler temporaries.
    need = 2 * n * n + 20 * n * d + (2 << 20)
    return need <= _FUSED_VMEM_BUDGET


def _round_up(n, m):
    return ((n + m - 1) // m) * m


def _full_spec(shape):
    """BlockSpec covering the whole array (no grid)."""
    n = len(shape)
    return pl.BlockSpec(shape, lambda *_, n=n: (0,) * n)


# --------------------------------------------------------------------------
# In-kernel math helpers
# --------------------------------------------------------------------------
def _l2_normalize_rows(x):
    # F.normalize(p=2, dim=1): x / max(||x||, eps) == x * rsqrt(max(ssq, eps^2))
    ssq = jnp.sum(x * x, axis=-1, keepdims=True)
    return x * jax.lax.rsqrt(jnp.maximum(ssq, EPS * EPS))


def _rnncell_normalize(h, a, td, feat, wa_t, wtd_t, wfeat_t, whh_t, b):
    # nn.RNNCell(tanh) on input [a, td, feat] with hidden h, then F.normalize.
    pre = (jnp.dot(a, wa_t, preferred_element_type=jnp.float32)      # (1,D) bcast
           + td * wtd_t                                              # (nc,1)*(1,D)
           + jnp.dot(feat, wfeat_t, preferred_element_type=jnp.float32)
           + jnp.dot(h, whh_t, preferred_element_type=jnp.float32)
           + b)
    return _l2_normalize_rows(jnp.tanh(pre))


# --------------------------------------------------------------------------
# Fused single-call branch kernels (adj fits VMEM)
# --------------------------------------------------------------------------
def _code_update_kernel(x_ref, adj_ref, adj_rows_ref, init_ref, init_rows_ref,
                        w1_ref, w2_ref, pat_ref, td_ref, feat_ref,
                        wa_ref, wtd_ref, wf_ref, whh_ref, b_ref, out_ref, *, alpha):
    # layer 1: h1 = relu(alpha * adj @ (x @ W1) + (1-alpha) * init)   (bf16 MXU)
    s = jnp.dot(x_ref[...], w1_ref[...], preferred_element_type=jnp.float32)
    h1 = jnp.maximum(
        alpha * jnp.dot(adj_ref[...], s.astype(jnp.bfloat16),
                        preferred_element_type=jnp.float32)
        + (1.0 - alpha) * init_ref[...], 0.0)
    # layer 2, only at gathered code rows, reassociated: (adj[ids] @ h1) @ W2
    t = jnp.dot(adj_rows_ref[...], h1.astype(jnp.bfloat16),
                preferred_element_type=jnp.float32)
    code_embed = jnp.maximum(
        alpha * jnp.dot(t.astype(jnp.bfloat16), w2_ref[...],
                        preferred_element_type=jnp.float32)
        + (1.0 - alpha) * init_rows_ref[...], 0.0)
    # RNNCell(tanh) + F.normalize
    out_ref[...] = _rnncell_normalize(code_embed, pat_ref[...], td_ref[...],
                                      feat_ref[...], wa_ref[...], wtd_ref[...],
                                      wf_ref[...], whh_ref[...], b_ref[...])


def _ancestor_update_kernel(x_ref, adj_ref, adj_rows_ref, init_ref, init_rows_ref,
                            w1_ref, w2_ref, out_ref, *, alpha):
    s = jnp.dot(x_ref[...], w1_ref[...], preferred_element_type=jnp.float32)
    h1 = jnp.maximum(
        alpha * jnp.dot(adj_ref[...], s.astype(jnp.bfloat16),
                        preferred_element_type=jnp.float32)
        + (1.0 - alpha) * init_ref[...], 0.0)
    t = jnp.dot(adj_rows_ref[...], h1.astype(jnp.bfloat16),
                preferred_element_type=jnp.float32)
    anc = jnp.maximum(
        alpha * jnp.dot(t.astype(jnp.bfloat16), w2_ref[...],
                        preferred_element_type=jnp.float32)
        + (1.0 - alpha) * init_rows_ref[...], 0.0)
    out_ref[...] = _l2_normalize_rows(anc)


def _patient_update_kernel(code_rows_ref, pat_ref, td_ref, feat_ref,
                           wa_ref, wtd_ref, wf_ref, whh_ref, b_ref, out_ref):
    code_mean = jnp.mean(code_rows_ref[...], axis=0, keepdims=True)   # (1, D)
    out_ref[...] = _rnncell_normalize(pat_ref[...], code_mean, td_ref[...],
                                      feat_ref[...], wa_ref[...], wtd_ref[...],
                                      wf_ref[...], whh_ref[...], b_ref[...])


def _project_kernel(pat_ref, td_ref, wemb_ref, bemb_ref, out_ref):
    emb = td_ref[...] * wemb_ref[...] + bemb_ref[...]    # Linear(1, D)
    out_ref[...] = pat_ref[...] * (1.0 + emb)


# --------------------------------------------------------------------------
# Finalize kernels for the tiled path (gathered layer-2 + epilogue, one call)
# --------------------------------------------------------------------------
# TODO(synk): grid the K axis of these finalize kernels for extremely large N
#             (s2 > ~24 MiB); single-block is fine for any realistic dense adj.
def _finalize_code_kernel(adj_rows_ref, s2_ref, init_rows_ref, pat_ref, td_ref,
                          feat_ref, wa_ref, wtd_ref, wf_ref, whh_ref, b_ref,
                          out_ref, *, alpha):
    prop = jnp.dot(adj_rows_ref[...], s2_ref[...].astype(jnp.bfloat16),
                   preferred_element_type=jnp.float32)
    code_embed = jnp.maximum(alpha * prop + (1.0 - alpha) * init_rows_ref[...], 0.0)
    out_ref[...] = _rnncell_normalize(code_embed, pat_ref[...], td_ref[...],
                                      feat_ref[...], wa_ref[...], wtd_ref[...],
                                      wf_ref[...], whh_ref[...], b_ref[...])


def _finalize_anc_kernel(adj_rows_ref, s2_ref, init_rows_ref, out_ref, *, alpha):
    prop = jnp.dot(adj_rows_ref[...], s2_ref[...].astype(jnp.bfloat16),
                   preferred_element_type=jnp.float32)
    anc = jnp.maximum(alpha * prop + (1.0 - alpha) * init_rows_ref[...], 0.0)
    out_ref[...] = _l2_normalize_rows(anc)


# --------------------------------------------------------------------------
# Grid-tiled GCN path (large N: adj does not fit VMEM)
# --------------------------------------------------------------------------
def _xw_kernel(x_ref, w_ref, o_ref):
    o_ref[...] = jnp.dot(x_ref[...], w_ref[...],
                         preferred_element_type=jnp.float32).astype(o_ref.dtype)


def matmul_rows_tiled(x, w, tm):
    Np, D = x.shape
    Do = w.shape[1]
    return pl.pallas_call(
        _xw_kernel,
        out_shape=jax.ShapeDtypeStruct((Np, Do), jnp.bfloat16),
        grid=(Np // tm,),
        in_specs=[pl.BlockSpec((tm, D), lambda i: (i, 0)),
                  pl.BlockSpec((D, Do), lambda i: (0, 0))],
        out_specs=pl.BlockSpec((tm, Do), lambda i: (i, 0)),
        compiler_params=pltpu.CompilerParams(
            dimension_semantics=("parallel",),
            vmem_limit_bytes=_TILED_VMEM_LIMIT),
    )(x, w)


def _gcn_prop_w2_kernel(adj_ref, s_ref, init_ref, w2_ref, o_ref, *,
                        alpha, tk, s_resident):
    k = pl.program_id(1)

    @pl.when(k == 0)
    def _():
        o_ref[...] = jnp.zeros_like(o_ref)

    if s_resident:
        off = pl.multiple_of(k * tk, 128)
        s_blk = s_ref[pl.ds(off, tk), :]
    else:
        s_blk = s_ref[...]
    # accumulate adj @ s directly into the resident output block (no scratch)
    o_ref[...] += jnp.dot(adj_ref[...], s_blk, preferred_element_type=jnp.float32)

    @pl.when(k == pl.num_programs(1) - 1)
    def _():
        # layer-1 blend + relu, then fuse the next layer's support s2 = h1 @ W2
        # into this epilogue (saves a launch and an (N, D) HBM round trip).
        h1 = jnp.maximum(alpha * o_ref[...] + (1.0 - alpha) * init_ref[...], 0.0)
        o_ref[...] = jnp.dot(h1.astype(jnp.bfloat16), w2_ref[...],
                             preferred_element_type=jnp.float32)


def gcn_layer1_support2_tiled(adj_bf, s1_bf, init, w2_bf, alpha, t):
    """s2 = relu(alpha*(adj@s1) + (1-alpha)*init) @ W2, tiled over adj.

    Row tiles are "parallel" (sharded across TensorCores on megacore parts),
    K tiles are "arbitrary".  s1 is kept VMEM-resident across the K axis when
    small enough, so it is DMA'd from HBM exactly once per layer.
    """
    Np, D = s1_bf.shape
    s_resident = 2 * Np * D <= (8 << 20)
    s_spec = (pl.BlockSpec((Np, D), lambda i, k: (0, 0)) if s_resident
              else pl.BlockSpec((t, D), lambda i, k: (k, 0)))
    return pl.pallas_call(
        functools.partial(_gcn_prop_w2_kernel, alpha=alpha, tk=t,
                          s_resident=s_resident),
        out_shape=jax.ShapeDtypeStruct((Np, D), jnp.float32),
        grid=(Np // t, Np // t),
        in_specs=[pl.BlockSpec((t, t), lambda i, k: (i, k)),
                  s_spec,
                  pl.BlockSpec((t, D), lambda i, k: (i, 0)),
                  pl.BlockSpec((D, D), lambda i, k: (0, 0))],
        out_specs=pl.BlockSpec((t, D), lambda i, k: (i, 0)),
        compiler_params=pltpu.CompilerParams(
            dimension_semantics=("parallel", "arbitrary"),
            vmem_limit_bytes=_TILED_VMEM_LIMIT),
        cost_estimate=pl.CostEstimate(
            flops=int(2 * Np * Np * D + 2 * Np * D * D), transcendentals=0,
            bytes_accessed=int(2 * Np * Np + 2 * Np * D + 8 * Np * D)),
    )(adj_bf, s1_bf, init, w2_bf)


def _prep_tiled(x_bf, adj_bf, init, tile):
    """Pick a (8,128)-legal tile and zero-pad N to a tile multiple (exact)."""
    N = adj_bf.shape[0]
    t = max(128, min(_round_up(tile, 128), _round_up(N, 128)))
    Np = _round_up(N, t)
    if Np != N:
        pad = Np - N
        adj_bf = jnp.pad(adj_bf, ((0, pad), (0, pad)))
        x_bf = jnp.pad(x_bf, ((0, pad), (0, 0)))
        init = jnp.pad(init, ((0, pad), (0, 0)))
    return x_bf, adj_bf, init, t


def gcn2_rows_tiled(x_bf, adj_bf, init, w1_bf, w2_bf, ids, alpha, tile):
    """Tiled layer-1 propagation (+ fused @W2); returns pieces for the
    gathered-row layer-2 finalize: (adj_rows, s2, init_rows)."""
    x_p, adj_p, init_p, t = _prep_tiled(x_bf, adj_bf, init, tile)
    s1 = matmul_rows_tiled(x_p, w1_bf, t)                               # (Np,D) bf16
    s2 = gcn_layer1_support2_tiled(adj_p, s1, init_p, w2_bf, alpha, t)  # (Np,D) f32
    adj_rows = jnp.take(adj_p, ids, axis=0)     # (nc, Np) bf16  -- tiny XLA gather
    init_rows = jnp.take(init, ids, axis=0)     # (nc, D)  f32
    return adj_rows, s2, init_rows


# --------------------------------------------------------------------------
# pallas_call wrappers
# --------------------------------------------------------------------------
def _call_full(kernel, operands, out_shape, *, vmem_limit=None, cost=None):
    params = (pltpu.CompilerParams(vmem_limit_bytes=int(vmem_limit))
              if vmem_limit is not None else None)
    return pl.pallas_call(
        kernel,
        out_shape=out_shape,
        in_specs=[_full_spec(o.shape) for o in operands],
        out_specs=_full_spec(out_shape.shape),
        compiler_params=params,
        cost_estimate=cost,
    )(*operands)


def code_update_fused(x_bf, adj_bf, adj_rows, init, init_rows, w1_bf, w2_bf,
                      pat_row, td, feat, rp, alpha):
    N, D = x_bf.shape
    nc, F = feat.shape
    operands = (x_bf, adj_bf, adj_rows, init, init_rows, w1_bf, w2_bf,
                pat_row, td, feat, rp['w_a_t'], rp['w_td_t'], rp['w_feat_t'],
                rp['whh_t'], rp['b'])
    flops = 2 * (N * D * D + N * N * D + nc * N * D + nc * D * D
                 + nc * D * (D + F + 1))
    bytes_acc = int(sum(int(o.size) * o.dtype.itemsize for o in operands)
                    + 4 * nc * D)
    return _call_full(
        functools.partial(_code_update_kernel, alpha=alpha), operands,
        jax.ShapeDtypeStruct((nc, D), jnp.float32),
        vmem_limit=_FUSED_VMEM_LIMIT,
        cost=pl.CostEstimate(flops=int(flops), transcendentals=int(nc * D),
                             bytes_accessed=bytes_acc))


def ancestor_update_fused(x_bf, adj_bf, adj_rows, init, init_rows, w1_bf, w2_bf,
                          alpha):
    N, D = x_bf.shape
    nc = adj_rows.shape[0]
    operands = (x_bf, adj_bf, adj_rows, init, init_rows, w1_bf, w2_bf)
    flops = 2 * (N * D * D + N * N * D + nc * N * D + nc * D * D)
    bytes_acc = int(sum(int(o.size) * o.dtype.itemsize for o in operands)
                    + 4 * nc * D)
    return _call_full(
        functools.partial(_ancestor_update_kernel, alpha=alpha), operands,
        jax.ShapeDtypeStruct((nc, D), jnp.float32),
        vmem_limit=_FUSED_VMEM_LIMIT,
        cost=pl.CostEstimate(flops=int(flops), transcendentals=int(nc),
                             bytes_accessed=bytes_acc))


def patient_update_fused(code_rows, pat_row, td, feat, rp):
    D = code_rows.shape[1]
    operands = (code_rows, pat_row, td, feat, rp['w_a_t'], rp['w_td_t'],
                rp['w_feat_t'], rp['whh_t'], rp['b'])
    return _call_full(_patient_update_kernel, operands,
                      jax.ShapeDtypeStruct((1, D), jnp.float32),
                      vmem_limit=_FUSED_VMEM_LIMIT)


def project(pat_row, td, wemb_t, bemb):
    operands = (pat_row, td, wemb_t, bemb)
    return _call_full(_project_kernel, operands,
                      jax.ShapeDtypeStruct(pat_row.shape, jnp.float32))


def code_update_tiled(x_bf, adj_bf, init, w1_bf, w2_bf, ids, pat_row, td, feat,
                      rp, alpha, tile):
    adj_rows, s2, init_rows = gcn2_rows_tiled(x_bf, adj_bf, init, w1_bf, w2_bf,
                                              ids, alpha, tile)
    nc, D = init_rows.shape
    operands = (adj_rows, s2, init_rows, pat_row, td, feat, rp['w_a_t'],
                rp['w_td_t'], rp['w_feat_t'], rp['whh_t'], rp['b'])
    return _call_full(functools.partial(_finalize_code_kernel, alpha=alpha),
                      operands, jax.ShapeDtypeStruct((nc, D), jnp.float32),
                      vmem_limit=_FUSED_VMEM_LIMIT)


def ancestor_update_tiled(x_bf, adj_bf, init, w1_bf, w2_bf, ids, alpha, tile):
    adj_rows, s2, init_rows = gcn2_rows_tiled(x_bf, adj_bf, init, w1_bf, w2_bf,
                                              ids, alpha, tile)
    nc, D = init_rows.shape
    operands = (adj_rows, s2, init_rows)
    return _call_full(functools.partial(_finalize_anc_kernel, alpha=alpha),
                      operands, jax.ShapeDtypeStruct((nc, D), jnp.float32),
                      vmem_limit=_FUSED_VMEM_LIMIT)


# --------------------------------------------------------------------------
# Parameter init (matching the torch module's shapes & init distributions)
# --------------------------------------------------------------------------
def init_params(key, dynamic_size, feature_size):
    D, Fz = dynamic_size, feature_size
    I = D + 1 + Fz                                  # update_input_size
    ks = jax.random.split(key, 12)
    stdv_gcn = 1.0 / math.sqrt(D)                   # GCN_1 uniform(-1/sqrt(out),.)
    stdv_rnn = 1.0 / math.sqrt(D)                   # nn.RNNCell default
    stdv_emb = 1.0                                  # NormalLinear(1, D)

    def unif(k, shape, s):
        return jax.random.uniform(k, shape, jnp.float32, -s, s)

    def split_rnn(w_ih, w_hh, b_ih, b_hh):
        # Pre-transpose and pre-split W_ih columns: [first-D block, timediff, feat]
        wih_t = w_ih.T                               # (I, D)
        return dict(w_a_t=wih_t[:D, :],              # (D, D)
                    w_td_t=wih_t[D:D + 1, :],        # (1, D)
                    w_feat_t=wih_t[D + 1:, :],       # (Fz, D)
                    whh_t=w_hh.T,                    # (D, D)
                    b=(b_ih + b_hh).reshape(1, D))   # b_ih + b_hh pre-added

    code = split_rnn(unif(ks[2], (D, I), stdv_rnn), unif(ks[3], (D, D), stdv_rnn),
                     unif(ks[4], (D,), stdv_rnn), unif(ks[5], (D,), stdv_rnn))
    pat = split_rnn(unif(ks[6], (D, I), stdv_rnn), unif(ks[7], (D, D), stdv_rnn),
                    unif(ks[8], (D,), stdv_rnn), unif(ks[9], (D,), stdv_rnn))
    return dict(
        gc1_w=unif(ks[0], (D, D), stdv_gcn),
        gc2_w=unif(ks[1], (D, D), stdv_gcn),
        code=code, pat=pat,
        emb_w_t=(jax.random.normal(ks[10], (D, 1), jnp.float32) * stdv_emb).T,
        emb_b=(jax.random.normal(ks[11], (D,), jnp.float32) * stdv_emb).reshape(1, D),
    )


# --------------------------------------------------------------------------
# ModelTree3.forward
# --------------------------------------------------------------------------
def model_forward(params, patient_dynamic, code_dynamic, init_code_dynamic, adj,
                  patientid, codeid, ancestorid, features=None, timediffs=None,
                  select=None, alpha=0.5, force_tiled=False, tile=512):
    N, D = code_dynamic.shape

    if select == 'project':
        patient_row = patient_dynamic[patientid]                      # (1, D)
        return project(patient_row, timediffs, params['emb_w_t'], params['emb_b'])

    if select == 'patient_update':
        patient_row = patient_dynamic[patientid]                      # (1, D)
        code_rows = jnp.take(code_dynamic, codeid, axis=0)            # (nc, D)
        return patient_update_fused(code_rows, patient_row, timediffs, features,
                                    params['pat'])

    # GCN branches: bf16 MXU inputs, f32 accumulation.  (In a real pipeline pass
    # a pre-cast bf16 adjacency to avoid the one-off cast below.)
    adj_bf = adj.astype(jnp.bfloat16)
    x_bf = code_dynamic.astype(jnp.bfloat16)
    w1_bf = params['gc1_w'].astype(jnp.bfloat16)
    w2_bf = params['gc2_w'].astype(jnp.bfloat16)
    init = init_code_dynamic
    fused_ok = (not force_tiled) and _fused_fits(N, D)

    if select == 'code_update':
        ids = codeid.astype(jnp.int32)
        patient_row = patient_dynamic[patientid]                      # (1, D)
        rp = params['code']
        if fused_ok:
            adj_rows = jnp.take(adj_bf, ids, axis=0)                  # (nc, N)
            init_rows = jnp.take(init, ids, axis=0)                   # (nc, D)
            return code_update_fused(x_bf, adj_bf, adj_rows, init, init_rows,
                                     w1_bf, w2_bf, patient_row, timediffs,
                                     features, rp, alpha)
        return code_update_tiled(x_bf, adj_bf, init, w1_bf, w2_bf, ids,
                                 patient_row, timediffs, features, rp, alpha, tile)

    if select == 'ancestor_update':
        ids = ancestorid.astype(jnp.int32)
        if fused_ok:
            adj_rows = jnp.take(adj_bf, ids, axis=0)
            init_rows = jnp.take(init, ids, axis=0)
            return ancestor_update_fused(x_bf, adj_bf, adj_rows, init, init_rows,
                                         w1_bf, w2_bf, alpha)
        return ancestor_update_tiled(x_bf, adj_bf, init, w1_bf, w2_bf, ids,
                                     alpha, tile)

    raise ValueError(f"unknown select: {select}")


# --------------------------------------------------------------------------
if __name__ == "__main__":
    key = jax.random.PRNGKey(0)
    D, Fz = 128, 8                      # dynamic_size (lane-dense), feature_size
    n_patient, n_code = 4, 256
    alpha = 0.8

    k_param, k_data = jax.random.split(key)
    params = init_params(k_param, D, Fz)

    kd = jax.random.split(k_data, 8)
    patient_dynamic = jax.random.normal(kd[0], (n_patient, D), jnp.float32)
    code_dynamic = jax.random.normal(kd[1], (n_code, D), jnp.float32)
    init_code_dynamic = jax.random.normal(kd[2], (n_code, D), jnp.float32)
    raw = jax.random.uniform(kd[3], (n_code, n_code), jnp.float32)
    sym = (raw + raw.T) * 0.5
    adj = sym / jnp.sum(sym, axis=1, keepdims=True)   # dense row-normalized adjacency

    patientid = jnp.array([1], dtype=jnp.int32)
    codeid = jnp.array([0, 3, 7, 12, 200, 33, 9, 57], dtype=jnp.int32)
    ancestorid = jnp.array([2, 5, 130, 77], dtype=jnp.int32)

    nc = codeid.shape[0]
    td_code = jax.random.uniform(kd[4], (nc, 1), jnp.float32)
    feat_code = jax.random.normal(kd[5], (nc, Fz), jnp.float32)
    td_pat = jax.random.uniform(kd[6], (1, 1), jnp.float32)
    feat_pat = jax.random.normal(kd[7], (1, Fz), jnp.float32)

    common = (params, patient_dynamic, code_dynamic, init_code_dynamic, adj,
              patientid, codeid, ancestorid)

    # Fused single-kernel path (primary whenever adj fits the VMEM budget).
    out_code = model_forward(*common, features=feat_code, timediffs=td_code,
                             select='code_update', alpha=alpha)
    out_anc = model_forward(*common, select='ancestor_update', alpha=alpha)
    out_pat = model_forward(*common, features=feat_pat, timediffs=td_pat,
                            select='patient_update', alpha=alpha)
    out_proj = model_forward(*common, timediffs=td_pat, select='project',
                             alpha=alpha)

    # Grid-tiled (large-N / megacore) path must agree with the fused path.
    out_code_t = model_forward(*common, features=feat_code, timediffs=td_code,
                               select='code_update', alpha=alpha,
                               force_tiled=True, tile=128)
    out_anc_t = model_forward(*common, select='ancestor_update', alpha=alpha,
                              force_tiled=True, tile=128)

    jax.block_until_ready((out_code, out_anc, out_pat, out_proj,
                           out_code_t, out_anc_t))
    assert out_code.shape == (nc, D)
    assert out_anc.shape == (ancestorid.shape[0], D)
    assert out_pat.shape == (1, D)
    assert out_proj.shape == (1, D)
    assert bool(jnp.all(jnp.isfinite(out_code)))
    assert bool(jnp.allclose(out_code, out_code_t, rtol=5e-2, atol=2e-2))
    assert bool(jnp.allclose(out_anc, out_anc_t, rtol=5e-2, atol=2e-2))
    print("KERNEL_OK")
</pallas_src>

<mosaic_0001>
module attributes {stable_mosaic.version = 11 : i64} {
  func.func @_code_update_kernel(%arg0: memref<256x128xbf16, #tpu.memory_space<vmem>>, %arg1: memref<256x256xbf16, #tpu.memory_space<vmem>>, %arg2: memref<8x256xbf16, #tpu.memory_space<vmem>>, %arg3: memref<256x128xf32, #tpu.memory_space<vmem>>, %arg4: memref<8x128xf32, #tpu.memory_space<vmem>>, %arg5: memref<128x128xbf16, #tpu.memory_space<vmem>>, %arg6: memref<128x128xbf16, #tpu.memory_space<vmem>>, %arg7: memref<1x128xf32, #tpu.memory_space<vmem>>, %arg8: memref<8x1xf32, #tpu.memory_space<vmem>>, %arg9: memref<8x8xf32, #tpu.memory_space<vmem>>, %arg10: memref<128x128xf32, #tpu.memory_space<vmem>>, %arg11: memref<1x128xf32, #tpu.memory_space<vmem>>, %arg12: memref<8x128xf32, #tpu.memory_space<vmem>>, %arg13: memref<128x128xf32, #tpu.memory_space<vmem>>, %arg14: memref<1x128xf32, #tpu.memory_space<vmem>>, %arg15: memref<8x128xf32, #tpu.memory_space<vmem>>) attributes {dimension_semantics = [], scalar_prefetch = 0 : i64, scratch_operands = 0 : i64, tpu.core_type = #tpu.core_type<tc>} {
    %c0 = arith.constant 0 : index
    %c0_0 = arith.constant 0 : index
    %0 = vector.load %arg0[%c0, %c0_0] : memref<256x128xbf16, #tpu.memory_space<vmem>>, vector<256x128xbf16>
    %c0_1 = arith.constant 0 : index
    %c0_2 = arith.constant 0 : index
    %1 = vector.load %arg5[%c0_1, %c0_2] : memref<128x128xbf16, #tpu.memory_space<vmem>>, vector<128x128xbf16>
    %cst = arith.constant dense<0.000000e+00> : vector<256x128xf32>
    %2 = tpu.matmul %0, %1, %cst {dimension_numbers = #tpu.dot_dimension_numbers<[1], [0], [0], [1], [0, 0, 1, 1], [], []>} : vector<256x128xbf16>, vector<128x128xbf16>, vector<256x128xf32> -> vector<256x128xf32>
    %c0_3 = arith.constant 0 : index
    %c0_4 = arith.constant 0 : index
    %3 = vector.load %arg1[%c0_3, %c0_4] : memref<256x256xbf16, #tpu.memory_space<vmem>>, vector<256x256xbf16>
    %4 = arith.truncf %2 : vector<256x128xf32> to vector<256x128xbf16>
    %cst_5 = arith.constant dense<0.000000e+00> : vector<256x128xf32>
    %5 = tpu.matmul %3, %4, %cst_5 {dimension_numbers = #tpu.dot_dimension_numbers<[1], [0], [0], [1], [0, 0, 1, 1], [], []>} : vector<256x256xbf16>, vector<256x128xbf16>, vector<256x128xf32> -> vector<256x128xf32>
    %cst_6 = arith.constant 8.000000e-01 : f32
    %6 = vector.broadcast %cst_6 : f32 to vector<256x128xf32>
    %7 = arith.mulf %6, %5 : vector<256x128xf32>
    %c0_7 = arith.constant 0 : index
    %c0_8 = arith.constant 0 : index
    %8 = vector.load %arg3[%c0_7, %c0_8] : memref<256x128xf32, #tpu.memory_space<vmem>>, vector<256x128xf32>
    %cst_9 = arith.constant 2.000000e-01 : f32
    %9 = vector.broadcast %cst_9 : f32 to vector<256x128xf32>
    %10 = arith.mulf %9, %8 : vector<256x128xf32>
    %11 = arith.addf %7, %10 : vector<256x128xf32>
    %cst_10 = arith.constant 0.000000e+00 : f32
    %12 = vector.broadcast %cst_10 : f32 to vector<256x128xf32>
    %13 = arith.maximumf %11, %12 : vector<256x128xf32>
    %c0_11 = arith.constant 0 : index
    %c0_12 = arith.constant 0 : index
    %14 = vector.load %arg2[%c0_11, %c0_12] : memref<8x256xbf16, #tpu.memory_space<vmem>>, vector<8x256xbf16>
    %15 = arith.truncf %13 : vector<256x128xf32> to vector<256x128xbf16>
    %cst_13 = arith.constant dense<0.000000e+00> : vector<8x128xf32>
    %16 = tpu.matmul %14, %15, %cst_13 {dimension_numbers = #tpu.dot_dimension_numbers<[1], [0], [0], [1], [0, 0, 1, 1], [], []>} : vector<8x256xbf16>, vector<256x128xbf16>, vector<8x128xf32> -> vector<8x128xf32>
    %17 = arith.truncf %16 : vector<8x128xf32> to vector<8x128xbf16>
    %c0_14 = arith.constant 0 : index
    %c0_15 = arith.constant 0 : index
    %18 = vector.load %arg6[%c0_14, %c0_15] : memref<128x128xbf16, #tpu.memory_space<vmem>>, vector<128x128xbf16>
    %cst_16 = arith.constant dense<0.000000e+00> : vector<8x128xf32>
    %19 = tpu.matmul %17, %18, %cst_16 {dimension_numbers = #tpu.dot_dimension_numbers<[1], [0], [0], [1], [0, 0, 1, 1], [], []>} : vector<8x128xbf16>, vector<128x128xbf16>, vector<8x128xf32> -> vector<8x128xf32>
    %cst_17 = arith.constant 8.000000e-01 : f32
    %20 = vector.broadcast %cst_17 : f32 to vector<8x128xf32>
    %21 = arith.mulf %20, %19 : vector<8x128xf32>
    %c0_18 = arith.constant 0 : index
    %c0_19 = arith.constant 0 : index
    %22 = vector.load %arg4[%c0_18, %c0_19] : memref<8x128xf32, #tpu.memory_space<vmem>>, vector<8x128xf32>
    %cst_20 = arith.constant 2.000000e-01 : f32
    %23 = vector.broadcast %cst_20 : f32 to vector<8x128xf32>
    %24 = arith.mulf %23, %22 : vector<8x128xf32>
    %25 = arith.addf %21, %24 : vector<8x128xf32>
    %cst_21 = arith.constant 0.000000e+00 : f32
    %26 = vector.broadcast %cst_21 : f32 to vector<8x128xf32>
    %27 = arith.maximumf %25, %26 : vector<8x128xf32>
    %c0_22 = arith.constant 0 : index
    %c0_23 = arith.constant 0 : index
    %28 = vector.load %arg7[%c0_22, %c0_23] : memref<1x128xf32, #tpu.memory_space<vmem>>, vector<1x128xf32>
    %c0_24 = arith.constant 0 : index
    %c0_25 = arith.constant 0 : index
    %29 = vector.load %arg8[%c0_24, %c0_25] : memref<8x1xf32, #tpu.memory_space<vmem>>, vector<8x1xf32>
    %c0_26 = arith.constant 0 : index
    %c0_27 = arith.constant 0 : index
    %30 = vector.load %arg9[%c0_26, %c0_27] : memref<8x8xf32, #tpu.memory_space<vmem>>, vector<8x8xf32>
    %c0_28 = arith.constant 0 : index
    %c0_29 = arith.constant 0 : index
    %31 = vector.load %arg10[%c0_28, %c0_29] : memref<128x128xf32, #tpu.memory_space<vmem>>, vector<128x128xf32>
    %c0_30 = arith.constant 0 : index
    %c0_31 = arith.constant 0 : index
    %32 = vector.load %arg11[%c0_30, %c0_31] : memref<1x128xf32, #tpu.memory_space<vmem>>, vector<1x128xf32>
    %c0_32 = arith.constant 0 : index
    %c0_33 = arith.constant 0 : index
    %33 = vector.load %arg12[%c0_32, %c0_33] : memref<8x128xf32, #tpu.memory_space<vmem>>, vector<8x128xf32>
    %c0_34 = arith.constant 0 : index
    %c0_35 = arith.constant 0 : index
    %34 = vector.load %arg13[%c0_34, %c0_35] : memref<128x128xf32, #tpu.memory_space<vmem>>, vector<128x128xf32>
    %c0_36 = arith.constant 0 : index
    %c0_37 = arith.constant 0 : index
    %35 = vector.load %arg14[%c0_36, %c0_37] : memref<1x128xf32, #tpu.memory_space<vmem>>, vector<1x128xf32>
    %cst_38 = arith.constant dense<0.000000e+00> : vector<1x128xf32>
    %36 = tpu.matmul %28, %31, %cst_38 {dimension_numbers = #tpu.dot_dimension_numbers<[1], [0], [0], [1], [0, 0, 1, 1], [], []>} : vector<1x128xf32>, vector<128x128xf32>, vector<1x128xf32> -> vector<1x128xf32>
    %37 = vector.broadcast %29 : vector<8x1xf32> to vector<8x128xf32>
    %38 = vector.broadcast %32 : vector<1x128xf32> to vector<8x128xf32>
    %39 = arith.mulf %37, %38 : vector<8x128xf32>
    %40 = vector.broadcast %36 : vector<1x128xf32> to vector<8x128xf32>
    %41 = arith.addf %40, %39 : vector<8x128xf32>
    %cst_39 = arith.constant dense<0.000000e+00> : vector<8x128xf32>
    %42 = tpu.matmul %30, %33, %cst_39 {dimension_numbers = #tpu.dot_dimension_numbers<[1], [0], [0], [1], [0, 0, 1, 1], [], []>} : vector<8x8xf32>, vector<8x128xf32>, vector<8x128xf32> -> vector<8x128xf32>
    %43 = arith.addf %41, %42 : vector<8x128xf32>
    %cst_40 = arith.constant dense<0.000000e+00> : vector<8x128xf32>
    %44 = tpu.matmul %27, %34, %cst_40 {dimension_numbers = #tpu.dot_dimension_numbers<[1], [0], [0], [1], [0, 0, 1, 1], [], []>} : vector<8x128xf32>, vector<128x128xf32>, vector<8x128xf32> -> vector<8x128xf32>
    %45 = arith.addf %43, %44 : vector<8x128xf32>
    %46 = vector.broadcast %35 : vector<1x128xf32> to vector<8x128xf32>
    %47 = arith.addf %45, %46 : vector<8x128xf32>
    %48 = math.tanh %47 : vector<8x128xf32>
    %49 = arith.mulf %48, %48 : vector<8x128xf32>
    %cst_41 = arith.constant dense<0.000000e+00> : vector<8xf32>
    %50 = vector.multi_reduction <add>, %49, %cst_41 [1] : vector<8x128xf32> to vector<8xf32>
    %51 = vector.shape_cast %50 : vector<8xf32> to vector<8x1xf32>
    %cst_42 = arith.constant 1.000000e-24 : f32
    %52 = vector.broadcast %cst_42 : f32 to vector<8x1xf32>
    %53 = arith.maximumf %51, %52 : vector<8x1xf32>
    %54 = math.rsqrt %53 : vector<8x1xf32>
    %55 = vector.broadcast %54 : vector<8x1xf32> to vector<8x128xf32>
    %56 = arith.mulf %48, %55 : vector<8x128xf32>
    %c0_43 = arith.constant 0 : index
    %c0_44 = arith.constant 0 : index
    %57 = vector.load %arg15[%c0_43, %c0_44] : memref<8x128xf32, #tpu.memory_space<vmem>>, vector<8x128xf32>
    tpu.vector_store %arg15[%c0_43, %c0_44], %56 {strides = array<i32>} : memref<8x128xf32, #tpu.memory_space<vmem>>, vector<8x128xf32>,
    return
  }
}

</mosaic_0001>

<bundles_post_ra>
// kernel: tpu_custom_call.1
= control target key start
LH: loop header
LB: loop body
LE: loop exit
PB: predicated region body
PF: predicated region fallthrough
CT: control target
= control target key end

     0   :  { %s2559_s0 = inlined_call_operand.hbm [shape: bf16[256,128], index: 0, kind: input, shape index: {}]   ;;  %s2560_s1 = inlined_call_operand.hbm [shape: bf16[256,256], index: 1, kind: input, shape index: {}]   ;;  %s2561_s2 = inlined_call_operand.vmem [shape: bf16[8,256], index: 2, kind: input, shape index: {}]   ;;  %s2562_s3 = inlined_call_operand.hbm [shape: f32[256,128], index: 3, kind: input, shape index: {}]   ;;  %s2563_s4 = inlined_call_operand.vmem [shape: f32[8,128], index: 4, kind: input, shape index: {}]   ;;  %s2564_s5 = inlined_call_operand.hbm [shape: bf16[128,128], index: 5, kind: input, shape index: {}]   ;;  %s2565_s6 = inlined_call_operand.hbm [shape: bf16[128,128], index: 6, kind: input, shape index: {}]   ;;  %s2566_s7 = inlined_call_operand.vmem [shape: f32[1,128], index: 7, kind: input, shape index: {}]   ;;  %s2567_s8 = inlined_call_operand.vmem [shape: f32[8,1], index: 8, kind: input, shape index: {}]   ;;  %s2568_s9 = inlined_call_operand.vmem [shape: f32[8,8], index: 9, kind: input, shape index: {}]   ;;  %s2569_s10 = inlined_call_operand.hbm [shape: f32[128,128], index: 10, kind: input, shape index: {}]   ;;  %s2570_s11 = inlined_call_operand.vmem [shape: f32[1,128], index: 11, kind: input, shape index: {}]   ;;  %s2571_s12 = inlined_call_operand.vmem [shape: f32[8,128], index: 12, kind: input, shape index: {}]   ;;  %s2572_s13 = inlined_call_operand.hbm [shape: f32[128,128], index: 13, kind: input, shape index: {}]   ;;  %s2573_s14 = inlined_call_operand.vmem [shape: f32[1,128], index: 14, kind: input, shape index: {}]   ;;  %s2574_s15 = inlined_call_operand.hbm [shape: f32[8,128], index: 15, kind: output, shape index: {}]  }
   0x1   :  { %2576 = sst [smem:[#allocation20_spill]] %s2574_s15 }
   0x2   :  { %20 = vsyncpa [#allocation3], 0 }
   0x3   :  { %21 = vsyncpa [#allocation6], 0 }
   0x4   :  { %22 = vsyncpa [#allocation9], 0 }
   0x5   :  { %23 = vsyncpa [#allocation12], 0 }
   0x6   :  { %24 = vsyncpa [#allocation4], 0  ;;  %s2259_s18 = smov [#allocation5]   ;;  %s2073_s22 = scalar_lea.hbm %s2560_s1, 4096 }
   0x7   :  { %s42_s19 = sshll.u32 %s2259_s18, 4  ;;  %p2074_p0 = scmp.ne.s32.totalorder %s2560_s1, %s2073_s22  ;;  %s43_s19 = int_to_ptr.vmem [resolvable:$true] %s42_s19 }
   0x8   :  { %p2077_p1 = scmp.lt.u32.totalorder %s2073_s22, %s2560_s1 }
   0xa   :  { %p2079_p2 = pnand %p2077_p1, %p2074_p0 }
   0xc   :  { %2082 = shalt.err (!%p2079_p2)
}
   0xd   :  { %s2083_s27 = scalar_lea.vmem %s43_s19, 4096  ;;  %p2088_p4 = scmp.lt.s32.totalorder %s43_s19, %s43_s19 }
   0xe   :  { %p2084_p3 = scmp.ne.s32.totalorder %s43_s19, %s2083_s27  ;;  %p2089_p5 = scmp.lt.s32.totalorder %s2083_s27, %s2083_s27 }
  0x10   :  { %p2090_p6 = por %p2089_p5, %p2088_p4 }
  0x12   :  { %p2091_p7 = pnand %p2090_p6, %p2084_p3 }
  0x14   :  { %2094 = shalt.err (!%p2091_p7)
}
  0x15   :  { %s2260_s28 = smov 128   ;;  %s2261_s29 = smov 8  }
  0x16   :  { %48 = dma.hbm_to_vmem [thread:$0]  %s2560_s1, 4096, %s43_s19, [#allocation6], %s2260_s28, %s2260_s28, %s2261_s29  }
  0x17   :  { %s2262_s17 = smov [#allocation8]   ;;  %s2263_s20 = smov [#allocation11]  }
  0x18   :  { %s70_s18 = sshll.u32 %s2262_s17, 4  ;;  %s100_s21 = sshll.u32 %s2263_s20, 4  ;;  %s71_s18 = int_to_ptr.vmem [resolvable:$true] %s70_s18  ;;  %s101_s21 = int_to_ptr.vmem [resolvable:$true] %s100_s21 }
  0x19   :  { %s2095_s24 = scalar_lea.hbm %s2564_s5, 1024 }
  0x1a   :  { %p2096_p8 = scmp.ne.s32.totalorder %s2564_s5, %s2095_s24  ;;  %p2099_p9 = scmp.lt.u32.totalorder %s2095_s24, %s2564_s5 }
  0x1c   :  { %p2101_p10 = pnand %p2099_p9, %p2096_p8 }
  0x1e   :  { %2104 = shalt.err (!%p2101_p10)
}
  0x1f   :  { %s2105_s1 = scalar_lea.vmem %s71_s18, 1024  ;;  %p2110_p12 = scmp.lt.s32.totalorder %s71_s18, %s71_s18 }
  0x20   :  { %p2106_p11 = scmp.ne.s32.totalorder %s71_s18, %s2105_s1  ;;  %p2111_p13 = scmp.lt.s32.totalorder %s2105_s1, %s2105_s1 }
  0x22   :  { %p2112_p0 = por %p2111_p13, %p2110_p12 }
  0x24   :  { %p2113_p1 = pnand %p2112_p0, %p2106_p11 }
  0x26   :  { %2116 = shalt.err (!%p2113_p1)
}
  0x27   :  { %s2264_s19 = smov 64   ;;  %s2265_s30 = smov 4  }
  0x28   :  { %76 = dma.hbm_to_vmem [thread:$0]  %s2564_s5, 1024, %s71_s18, [#allocation9], %s2264_s19, %s2264_s19, %s2265_s30  }
  0x29   :  { %s2117_s22 = scalar_lea.hbm %s2569_s10, 2048 }
  0x2a   :  { %p2118_p2 = scmp.ne.s32.totalorder %s2569_s10, %s2117_s22  ;;  %p2121_p3 = scmp.lt.u32.totalorder %s2117_s22, %s2569_s10 }
  0x2c   :  { %p2123_p4 = pnand %p2121_p3, %p2118_p2 }
  0x2e   :  { %2126 = shalt.err (!%p2123_p4)
}
  0x2f   :  { %s2127_s27 = scalar_lea.vmem %s101_s21, 2048  ;;  %p2132_p6 = scmp.lt.s32.totalorder %s101_s21, %s101_s21 }
  0x30   :  { %p2128_p5 = scmp.ne.s32.totalorder %s101_s21, %s2127_s27  ;;  %p2133_p7 = scmp.lt.s32.totalorder %s2127_s27, %s2127_s27 }
  0x32   :  { %p2134_p8 = por %p2133_p7, %p2132_p6 }
  0x34   :  { %p2135_p9 = pnand %p2134_p8, %p2128_p5 }
  0x36   :  { %2138 = shalt.err (!%p2135_p9)
}
  0x37   :  { %106 = dma.hbm_to_vmem [thread:$0]  %s2569_s10, 2048, %s101_s21, [#allocation12], %s2260_s28, %s2260_s28, %s2261_s29  }
  0x38   :  { %s2266_s1 = smov [#allocation2]   ;;  %s2267_s17 = smov [#allocation7]  }
  0x39   :  { %s30_s16 = sshll.u32 %s2266_s1, 4  ;;  %s56_s15 = sshll.u32 %s2267_s17, 4  ;;  %s31_s16 = int_to_ptr.vmem [resolvable:$true] %s30_s16  ;;  %s57_s15 = int_to_ptr.vmem [resolvable:$true] %s56_s15 }
  0x3a   :  { %s2139_s23 = scalar_lea.hbm %s2559_s0, 2048 }
  0x3b   :  { %p2140_p10 = scmp.ne.s32.totalorder %s2559_s0, %s2139_s23  ;;  %p2143_p11 = scmp.lt.u32.totalorder %s2139_s23, %s2559_s0 }
  0x3d   :  { %p2145_p12 = pnand %p2143_p11, %p2140_p10 }
  0x3f   :  { %2148 = shalt.err (!%p2145_p12)
}
  0x40   :  { %s2149_s10 = scalar_lea.vmem %s31_s16, 2048  ;;  %p2154_p0 = scmp.lt.s32.totalorder %s31_s16, %s31_s16 }
  0x41   :  { %p2150_p13 = scmp.ne.s32.totalorder %s31_s16, %s2149_s10  ;;  %p2155_p1 = scmp.lt.s32.totalorder %s2149_s10, %s2149_s10 }
  0x43   :  { %p2156_p2 = por %p2155_p1, %p2154_p0 }
  0x45   :  { %p2157_p3 = pnand %p2156_p2, %p2150_p13 }
  0x47   :  { %2160 = shalt.err (!%p2157_p3)
}
  0x48   :  { %36 = dma.hbm_to_vmem [thread:$0]  %s2559_s0, 2048, %s31_s16, [#allocation3], %s2264_s19, %s2264_s19, %s2265_s30  }
  0x49   :  { %s2161_s17 = scalar_lea.hbm %s2562_s3, 4096 }
  0x4a   :  { %p2162_p4 = scmp.ne.s32.totalorder %s2562_s3, %s2161_s17  ;;  %p2165_p5 = scmp.lt.u32.totalorder %s2161_s17, %s2562_s3 }
  0x4c   :  { %p2167_p6 = pnand %p2165_p5, %p2162_p4 }
  0x4e   :  { %2170 = shalt.err (!%p2167_p6)
}
  0x4f   :  { %s2171_s25 = scalar_lea.vmem %s57_s15, 4096  ;;  %p2176_p8 = scmp.lt.s32.totalorder %s57_s15, %s57_s15 }
  0x50   :  { %p2172_p7 = scmp.ne.s32.totalorder %s57_s15, %s2171_s25  ;;  %p2177_p9 = scmp.lt.s32.totalorder %s2171_s25, %s2171_s25 }
  0x52   :  { %p2178_p10 = por %p2177_p9, %p2176_p8 }
  0x54   :  { %p2179_p11 = pnand %p2178_p10, %p2172_p7 }
  0x56   :  { %2182 = shalt.err (!%p2179_p11)
}
  0x57   :  { %62 = dma.hbm_to_vmem [thread:$0]  %s2562_s3, 4096, %s57_s15, [#allocation6], %s2260_s28, %s2260_s28, %s2261_s29  }
  0x58   :  { %s2268_s26 = smov [#allocation10]   ;;  %s2269_s10 = smov [#allocation13]  }
  0x59   :  { %s82_s27 = sshll.u32 %s2268_s26, 4  ;;  %s116_s21 = sshll.u32 %s2269_s10, 4  ;;  %s83_s27 = int_to_ptr.vmem [resolvable:$true] %s82_s27  ;;  %s117_s21 = int_to_ptr.vmem [resolvable:$true] %s116_s21 }
  0x5a   :  { %s2183_s1 = scalar_lea.hbm %s2565_s6, 1024 }
  0x5b   :  { %p2184_p12 = scmp.ne.s32.totalorder %s2565_s6, %s2183_s1  ;;  %p2187_p13 = scmp.lt.u32.totalorder %s2183_s1, %s2565_s6 }
  0x5d   :  { %p2189_p0 = pnand %p2187_p13, %p2184_p12 }
  0x5f   :  { %2192 = shalt.err (!%p2189_p0)
}
  0x60   :  { %s2193_s3 = scalar_lea.vmem %s83_s27, 1024  ;;  %p2198_p2 = scmp.lt.s32.totalorder %s83_s27, %s83_s27 }
  0x61   :  { %p2194_p1 = scmp.ne.s32.totalorder %s83_s27, %s2193_s3  ;;  %p2199_p3 = scmp.lt.s32.totalorder %s2193_s3, %s2193_s3 }
  0x63   :  { %p2200_p4 = por %p2199_p3, %p2198_p2 }
  0x65   :  { %p2201_p5 = pnand %p2200_p4, %p2194_p1 }
  0x67   :  { %2204 = shalt.err (!%p2201_p5)
}
  0x68   :  { %88 = dma.hbm_to_vmem [thread:$0]  %s2565_s6, 1024, %s83_s27, [#allocation9], %s2264_s19, %s2264_s19, %s2265_s30  }
  0x69   :  { %s2205_s16 = scalar_lea.hbm %s2572_s13, 2048 }
  0x6a   :  { %p2206_p6 = scmp.ne.s32.totalorder %s2572_s13, %s2205_s16  ;;  %p2209_p7 = scmp.lt.u32.totalorder %s2205_s16, %s2572_s13 }
  0x6c   :  { %p2211_p8 = pnand %p2209_p7, %p2206_p6 }
  0x6e   :  { %2214 = shalt.err (!%p2211_p8)
}
  0x6f   :  { %s2215_s1 = scalar_lea.vmem %s117_s21, 2048  ;;  %p2220_p10 = scmp.lt.s32.totalorder %s117_s21, %s117_s21 }
  0x70   :  { %p2216_p9 = scmp.ne.s32.totalorder %s117_s21, %s2215_s1  ;;  %p2221_p11 = scmp.lt.s32.totalorder %s2215_s1, %s2215_s1 }
  0x72   :  { %p2222_p12 = por %p2221_p11, %p2220_p10 }
  0x74   :  { %p2223_p13 = pnand %p2222_p12, %p2216_p9 }
  0x76   :  { %2226 = shalt.err (!%p2223_p13)
}
  0x77   :  { %122 = dma.hbm_to_vmem [thread:$0]  %s2572_s13, 2048, %s117_s21, [#allocation12], %s2260_s28, %s2260_s28, %s2261_s29  }
  0x78   :  { %2249 = dma.done.wait [#allocation3], 2048  }
  0x79   :  { %2250 = vsyncadd [#allocation3], 4294965248 }
  0x7a   :  { %2251 = dma.done.wait [#allocation6], 8192  }
  0x7b   :  { %2252 = vsyncadd [#allocation6], 4294959104 }
  0x7c   :  { %2253 = dma.done.wait [#allocation9], 2048  }
  0x7d   :  { %2254 = vsyncadd [#allocation9], 4294965248 }
  0x7e   :  { %2255 = dma.done.wait [#allocation12], 4096  }
  0x7f   :  { %2256 = vsyncadd [#allocation12], 4294963200  ;;  %v1987_v0 = vld [vmem:[#allocation8] sm:$0xff]   ;;  %v1988_v1 = vld [vmem:[#allocation8 + $0x8] sm:$0xff]   ;;  %vm2271_vm0 = vmmov 0   ;;  %vm1328_vm1 = vcmask 64512  }
  0x80   :  { %1779 = vmatprep.subr.bf16.mxu0 %v1987_v0  ;;  %v1989_v2 = vld [vmem:[#allocation8 + $0x10] sm:$0xff]   ;;  %v1990_v3 = vld [vmem:[#allocation8 + $0x18] sm:$0xff]   ;;  %v1995_v4 = vld [vmem:[#allocation2] sm:$0xff]  }
  0x81   :  { %1780 = vmatpush3.bf16.msra.mxu0 %v1987_v0  ;;  %1795 = vmatprep.mubr.bf16.mxu0 %v1995_v4  ;;  %v1991_v5 = vld [vmem:[#allocation8 + $0x20] sm:$0xff]   ;;  %v1992_v6 = vld [vmem:[#allocation8 + $0x28] sm:$0xff]   ;;  %v1993_v7 = vld [vmem:[#allocation8 + $0x30] sm:$0xff]  }
  0x82   :  { %1781 = vmatprep.subr.bf16.mxu0 %v1988_v1  ;;  %v1994_v8 = vld [vmem:[#allocation8 + $0x38] sm:$0xff]   ;;  %v1996_v9 = vld [vmem:[#allocation2 + $0x8] sm:$0xff]   ;;  %v1997_v10 = vld [vmem:[#allocation2 + $0x10] sm:$0xff]  }
  0x83   :  { %v1998_v11 = vld [vmem:[#allocation2 + $0x18] sm:$0xff]   ;;  %v1999_v12 = vld [vmem:[#allocation2 + $0x20] sm:$0xff]   ;;  %v2000_v13 = vld [vmem:[#allocation2 + $0x28] sm:$0xff]  }
  0x84   :  { %v2001_v14 = vld [vmem:[#allocation2 + $0x30] sm:$0xff]   ;;  %v2002_v15 = vld [vmem:[#allocation2 + $0x38] sm:$0xff]   ;;  %v2003_v16 = vld [vmem:[#allocation2 + $0x40] sm:$0xff]  }
  0x85   :  { %1782 = vmatpush3.bf16.msra.mxu0 %v1988_v1  ;;  %v2004_v17 = vld [vmem:[#allocation2 + $0x48] sm:$0xff]   ;;  %v2005_v18 = vld [vmem:[#allocation2 + $0x50] sm:$0xff]   ;;  %v2006_v19 = vld [vmem:[#allocation2 + $0x58] sm:$0xff]  }
  0x86   :  { %1783 = vmatprep.subr.bf16.mxu0 %v1989_v2  ;;  %v2007_v20 = vld [vmem:[#allocation2 + $0x60] sm:$0xff]   ;;  %v2008_v21 = vld [vmem:[#allocation2 + $0x68] sm:$0xff]   ;;  %v2009_v22 = vld [vmem:[#allocation2 + $0x70] sm:$0xff]  }
  0x87   :  { %v2010_v23 = vld [vmem:[#allocation2 + $0x78] sm:$0xff]   ;;  %v2013_v24 = vld [vmem:[#allocation5 + $0x4] ss:$8 sps:$4 sm:$0xff]  }
  0x88   :  { %740 = vmatprep.mubr.bf16.mxu1 %v2013_v24  ;;  %v2035_v24 = vld [vmem:[#allocation5 + $0x84] ss:$8 sps:$4 sm:$0xff]  }
  0x89   :  { %1784 = vmatpush3.bf16.msra.mxu0 %v1989_v2 }
  0x8a   :  { %1785 = vmatprep.subr.bf16.mxu0 %v1990_v3 }
  0x8d   :  { %1786 = vmatpush3.bf16.msra.mxu0 %v1990_v3 }
  0x8e   :  { %1787 = vmatprep.subr.bf16.mxu0 %v1991_v5 }
  0x91   :  { %1788 = vmatpush3.bf16.msra.mxu0 %v1991_v5 }
  0x92   :  { %1789 = vmatprep.subr.bf16.mxu0 %v1992_v6 }
  0x95   :  { %1790 = vmatpush3.bf16.msra.mxu0 %v1992_v6 }
  0x96   :  { %1791 = vmatprep.subr.bf16.mxu0 %v1993_v7 }
  0x99   :  { %1792 = vmatpush3.bf16.msra.mxu0 %v1993_v7 }
  0x9a   :  { %1793 = vmatprep.subr.bf16.mxu0 %v1994_v8 }
  0x9d   :  { %1794 = vmatpush3.bf16.msra.mxu0 %v1994_v8 }
  0xa0   :  { %1796 = vmatmul.mubr.bf16.vlgmr.msra.gmra.mrb[0].mxu0 %v1996_v9  ;;  %v2011_v9 = vld [vmem:[#allocation5] ss:$8 sps:$4 sm:$0xff]  }
  0xa1   :  { %1799 = vmatprep.mubr.bf16.mxu0 %v1997_v10  ;;  %v2014_v10 = vld [vmem:[#allocation5 + $0x14] ss:$8 sps:$4 sm:$0xff]  }
  0xa8   :  { %1800 = vmatmul.mubr.bf16.gmra.mrb[4].mxu0 %v1998_v11  ;;  %v2016_v11 = vld [vmem:[#allocation5 + $0x10] ss:$8 sps:$4 sm:$0xff]  }
  0xa9   :  { %1803 = vmatprep.mubr.bf16.mxu0 %v1999_v12  ;;  %v2017_v12 = vld [vmem:[#allocation5 + $0x24] ss:$8 sps:$4 sm:$0xff]  }
  0xb0   :  { %1804 = vmatmul.mubr.bf16.gmra.mrb[8].mxu0 %v2000_v13  ;;  %v2019_v13 = vld [vmem:[#allocation5 + $0x20] ss:$8 sps:$4 sm:$0xff]  }
  0xb1   :  { %1807 = vmatprep.mubr.bf16.mxu0 %v2001_v14  ;;  %v2020_v14 = vld [vmem:[#allocation5 + $0x34] ss:$8 sps:$4 sm:$0xff]  }
  0xb8   :  { %1808 = vmatmul.mubr.bf16.gmra.mrb[12].mxu0 %v2002_v15  ;;  %v2022_v15 = vld [vmem:[#allocation5 + $0x30] ss:$8 sps:$4 sm:$0xff]  }
  0xb9   :  { %1811 = vmatprep.mubr.bf16.mxu0 %v2003_v16  ;;  %v2023_v16 = vld [vmem:[#allocation5 + $0x44] ss:$8 sps:$4 sm:$0xff]  }
  0xc0   :  { %1812 = vmatmul.mubr.bf16.gmra.mrb[16].mxu0 %v2004_v17  ;;  %v2025_v17 = vld [vmem:[#allocation5 + $0x40] ss:$8 sps:$4 sm:$0xff]  }
  0xc1   :  { %1815 = vmatprep.mubr.bf16.mxu0 %v2005_v18  ;;  %v2026_v18 = vld [vmem:[#allocation5 + $0x54] ss:$8 sps:$4 sm:$0xff]  }
  0xc8   :  { %1816 = vmatmul.mubr.bf16.gmra.mrb[20].mxu0 %v2006_v19  ;;  %v2028_v19 = vld [vmem:[#allocation5 + $0x50] ss:$8 sps:$4 sm:$0xff]  }
  0xc9   :  { %1819 = vmatprep.mubr.bf16.mxu0 %v2007_v20  ;;  %v2029_v20 = vld [vmem:[#allocation5 + $0x64] ss:$8 sps:$4 sm:$0xff]  }
  0xd0   :  { %1820 = vmatmul.mubr.bf16.gmra.mrb[24].mxu0 %v2008_v21  ;;  %v2031_v21 = vld [vmem:[#allocation5 + $0x60] ss:$8 sps:$4 sm:$0xff]  }
  0xd1   :  { %1823 = vmatprep.mubr.bf16.mxu0 %v2009_v22  ;;  %v2032_v22 = vld [vmem:[#allocation5 + $0x74] ss:$8 sps:$4 sm:$0xff]  }
  0xd8   :  { %1824 = vmatmul.mubr.bf16.gmra.mrb[28].mxu0 %v2010_v23  ;;  %v2034_v23 = vld [vmem:[#allocation5 + $0x70] ss:$8 sps:$4 sm:$0xff]  }
 0x173   :  { %v1797_v25 = vpop.f32.mrb[0].mxu0 }
 0x174   :  { %v373_v26 = vpop.f32.mrb[1].mxu0 }
 0x175   :  { %v1798_v27 = vpop.f32.mrb[2].mxu0 }
 0x176   :  { %v533_v28 = vpack.c.bf16 %v1798_v27, %v1797_v25  ;;  %v376_v29 = vpop.f32.mrb[3].mxu0  ;;  %v2037_v25 = vld [vmem:[#allocation5 + $0x80] ss:$8 sps:$4 sm:$0xff]   ;;  %v2040_v27 = vld [vmem:[#allocation5 + $0x90] ss:$8 sps:$4 sm:$0xff]  }
 0x177   :  { %v532_v30 = vpack.c.bf16 %v376_v29, %v373_v26  ;;  %v2038_v26 = vld [vmem:[#allocation5 + $0x94] ss:$8 sps:$4 sm:$0xff]   ;;  %v2043_v29 = vld [vmem:[#allocation5 + $0xa0] ss:$8 sps:$4 sm:$0xff]  }
 0x17b   :  { %v1801_v31 = vpop.f32.mrb[4].mxu0 }
 0x17c   :  { %v389_v32 = vpop.f32.mrb[5].mxu0 }
 0x17d   :  { %v1802_v33 = vpop.f32.mrb[6].mxu0 }
 0x17e   :  { %v535_v34 = vpack.c.bf16 %v1802_v33, %v1801_v31  ;;  %v392_v35 = vpop.f32.mrb[7].mxu0  ;;  %v2046_v31 = vld [vmem:[#allocation5 + $0xb0] ss:$8 sps:$4 sm:$0xff]   ;;  %v2049_v33 = vld [vmem:[#allocation5 + $0xc0] ss:$8 sps:$4 sm:$0xff]  }
 0x17f   :  { %v534_v36 = vpack.c.bf16 %v392_v35, %v389_v32  ;;  %v2047_v32 = vld [vmem:[#allocation5 + $0xc4] ss:$8 sps:$4 sm:$0xff]   ;;  %v2052_v35 = vld [vmem:[#allocation5 + $0xd0] ss:$8 sps:$4 sm:$0xff]  }
 0x183   :  { %v1805_v37 = vpop.f32.mrb[8].mxu0 }
 0x184   :  { %v405_v38 = vpop.f32.mrb[9].mxu0 }
 0x185   :  { %v1806_v39 = vpop.f32.mrb[10].mxu0 }
 0x186   :  { %v537_v40 = vpack.c.bf16 %v1806_v39, %v1805_v37  ;;  %v408_v41 = vpop.f32.mrb[11].mxu0  ;;  %v2055_v37 = vld [vmem:[#allocation5 + $0xe0] ss:$8 sps:$4 sm:$0xff]   ;;  %v2058_v39 = vld [vmem:[#allocation5 + $0xf0] ss:$8 sps:$4 sm:$0xff]  }
 0x187   :  { %v536_v42 = vpack.c.bf16 %v408_v41, %v405_v38  ;;  %v2056_v38 = vld [vmem:[#allocation5 + $0xf4] ss:$8 sps:$4 sm:$0xff]  }
 0x18b   :  { %v1809_v43 = vpop.f32.mrb[12].mxu0 }
 0x18c   :  { %v421_v44 = vpop.f32.mrb[13].mxu0 }
 0x18d   :  { %v1810_v45 = vpop.f32.mrb[14].mxu0 }
 0x18e   :  { %v539_v46 = vpack.c.bf16 %v1810_v45, %v1809_v43  ;;  %v424_v47 = vpop.f32.mrb[15].mxu0  ;;  %v902_v43 = vld [vmem:[#allocation7 + $0x8] sm:$0xff] }
 0x18f   :  { %v538_v48 = vpack.c.bf16 %v424_v47, %v421_v44 }
 0x193   :  { %v1813_v49 = vpop.f32.mrb[16].mxu0 }
 0x194   :  { %v437_v50 = vpop.f32.mrb[17].mxu0 }
 0x195   :  { %v1814_v51 = vpop.f32.mrb[18].mxu0 }
 0x196   :  { %v541_v52 = vpack.c.bf16 %v1814_v51, %v1813_v49  ;;  %v440_v53 = vpop.f32.mrb[19].mxu0 }
 0x197   :  { %v540_v54 = vpack.c.bf16 %v440_v53, %v437_v50  ;;  %v934_v50 = vmul.f32 0.2, %v902_v43  ;;  %v2463_v53 = vld [vmem:[%s2561_s2] sm:$0xff] }
 0x199   :  { %1600 = vmatprep.subr.bf16.mxu1 %v540_v54  ;;  %v903_v54 = vld [vmem:[#allocation7 + $0x10] sm:$0xff] }
 0x19a   :  { %1601 = vmatpush3.bf16.msra.mxu1 %v532_v30  ;;  %v2044_v30 = vld [vmem:[#allocation5 + $0xb4] ss:$8 sps:$4 sm:$0xff]  }
 0x19b   :  { %v1817_v55 = vpop.f32.mrb[20].mxu0  ;;  %1602 = vmatprep.subr.bf16.mxu1 %v541_v52 }
 0x19c   :  { %v453_v56 = vpop.f32.mrb[21].mxu0 }
 0x19d   :  { %v1818_v57 = vpop.f32.mrb[22].mxu0 }
 0x19e   :  { %v543_v58 = vpack.c.bf16 %v1818_v57, %v1817_v55  ;;  %v456_v59 = vpop.f32.mrb[23].mxu0  ;;  %1603 = vmatpush3.bf16.msra.mxu1 %v533_v28  ;;  %v2041_v28 = vld [vmem:[#allocation5 + $0xa4] ss:$8 sps:$4 sm:$0xff]   ;;  %v1564_v55 = vcombine.high %v2463_v53, %v2463_v53 }
 0x19f   :  { %v542_v60 = vpack.c.bf16 %v456_v59, %v453_v56  ;;  %v904_v59 = vld [vmem:[#allocation7 + $0x18] sm:$0xff] }
 0x1a0   :  { %1085 = vmatprep.mubr.bf16.mxu0 %v1564_v55 }
 0x1a1   :  { %1604 = vmatprep.subr.bf16.mxu1 %v542_v60 }
 0x1a2   :  { %1605 = vmatpush3.bf16.msra.mxu1 %v534_v36  ;;  %v2053_v36 = vld [vmem:[#allocation5 + $0xe4] ss:$8 sps:$4 sm:$0xff]  }
 0x1a3   :  { %v1821_v61 = vpop.f32.mrb[24].mxu0  ;;  %1606 = vmatprep.subr.bf16.mxu1 %v543_v58 }
 0x1a4   :  { %v469_v62 = vpop.f32.mrb[25].mxu0 }
 0x1a5   :  { %v1822_v63 = vpop.f32.mrb[26].mxu0 }
 0x1a6   :  { %v545_v0 = vpack.c.bf16 %v1822_v63, %v1821_v61  ;;  %v472_v1 = vpop.f32.mrb[27].mxu0  ;;  %1607 = vmatpush3.bf16.msra.mxu1 %v535_v34  ;;  %v2050_v34 = vld [vmem:[#allocation5 + $0xd4] ss:$8 sps:$4 sm:$0xff]   ;;  %v935_v63 = vmul.f32 0.2, %v903_v54 }
 0x1a7   :  { %v544_v2 = vpack.c.bf16 %v472_v1, %v469_v62 }
 0x1a9   :  { %1608 = vmatprep.subr.bf16.mxu1 %v544_v2 }
 0x1aa   :  { %1609 = vmatpush3.bf16.msra.mxu1 %v536_v42 }
 0x1ab   :  { %v1825_v3 = vpop.f32.mrb[28].mxu0  ;;  %1610 = vmatprep.subr.bf16.mxu1 %v545_v0 }
 0x1ac   :  { %v485_v4 = vpop.f32.mrb[29].mxu0 }
 0x1ad   :  { %v1826_v5 = vpop.f32.mrb[30].mxu0 }
 0x1ae   :  { %v547_v6 = vpack.c.bf16 %v1826_v5, %v1825_v3  ;;  %v488_v7 = vpop.f32.mrb[31].mxu0  ;;  %1611 = vmatpush3.bf16.msra.mxu1 %v537_v40  ;;  %v901_v40 = vld [vmem:[#allocation7] sm:$0xff]  ;;  %v936_v5 = vmul.f32 0.2, %v904_v59 }
 0x1af   :  { %v546_v8 = vpack.c.bf16 %v488_v7, %v485_v4  ;;  %v933_v45 = vmul.f32 0.2, %v901_v40 }
 0x1b1   :  { %1612 = vmatprep.subr.bf16.mxu1 %v546_v8  ;;  %v905_v8 = vld [vmem:[#allocation7 + $0x20] sm:$0xff] }
 0x1b2   :  { %1613 = vmatpush3.bf16.msra.mxu1 %v538_v48 }
 0x1b3   :  { %1614 = vmatprep.subr.bf16.mxu1 %v547_v6 }
 0x1b6   :  { %1615 = vmatpush3.bf16.msra.mxu1 %v539_v46 }
 0x1b9   :  { %741 = vmatmul.mubr.bf16.vlgmr.msra.gmra.mrb[0].mxu1 %v2011_v9 }
 0x1ba   :  { %748 = vmatprep.mubr.bf16.mxu1 %v2014_v10 }
 0x1c1   :  { %749 = vmatmul.mubr.bf16.gmra.mrb[4].mxu1 %v2016_v11 }
 0x1c2   :  { %756 = vmatprep.mubr.bf16.mxu1 %v2017_v12  ;;  %v906_v12 = vld [vmem:[#allocation7 + $0x28] sm:$0xff] }
 0x1c9   :  { %757 = vmatmul.mubr.bf16.gmra.mrb[8].mxu1 %v2019_v13 }
 0x1ca   :  { %764 = vmatprep.mubr.bf16.mxu1 %v2020_v14 }
 0x1d1   :  { %765 = vmatmul.mubr.bf16.gmra.mrb[12].mxu1 %v2022_v15 }
 0x1d2   :  { %772 = vmatprep.mubr.bf16.mxu1 %v2023_v16  ;;  %v937_v16 = vmul.f32 0.2, %v905_v8 }
 0x1d9   :  { %773 = vmatmul.mubr.bf16.gmra.mrb[16].mxu1 %v2025_v17 }
 0x1da   :  { %780 = vmatprep.mubr.bf16.mxu1 %v2026_v18 }
 0x1e1   :  { %781 = vmatmul.mubr.bf16.gmra.mrb[20].mxu1 %v2028_v19 }
 0x1e2   :  { %788 = vmatprep.mubr.bf16.mxu1 %v2029_v20 }
 0x1e9   :  { %789 = vmatmul.mubr.bf16.gmra.mrb[24].mxu1 %v2031_v21 }
 0x1ea   :  { %796 = vmatprep.mubr.bf16.mxu1 %v2032_v22  ;;  %v938_v22 = vmul.f32 0.2, %v906_v12 }
 0x1f1   :  { %797 = vmatmul.mubr.bf16.gmra.mrb[28].mxu1 %v2034_v23 }
 0x1f2   :  { %804 = vmatprep.mubr.bf16.mxu1 %v2035_v24 }
 0x1f9   :  { %805 = vmatmul.mubr.bf16.gmra.mrb[32].mxu1 %v2037_v25  ;;  %v907_v25 = vld [vmem:[#allocation7 + $0x30] sm:$0xff] }
 0x1fa   :  { %812 = vmatprep.mubr.bf16.mxu1 %v2038_v26 }
 0x201   :  { %813 = vmatmul.mubr.bf16.gmra.mrb[36].mxu1 %v2040_v27 }
 0x202   :  { %820 = vmatprep.mubr.bf16.mxu1 %v2041_v28 }
 0x209   :  { %821 = vmatmul.mubr.bf16.gmra.mrb[40].mxu1 %v2043_v29  ;;  %v908_v29 = vld [vmem:[#allocation7 + $0x38] sm:$0xff] }
 0x20a   :  { %828 = vmatprep.mubr.bf16.mxu1 %v2044_v30 }
 0x211   :  { %829 = vmatmul.mubr.bf16.gmra.mrb[44].mxu1 %v2046_v31 }
 0x212   :  { %836 = vmatprep.mubr.bf16.mxu1 %v2047_v32 }
 0x219   :  { %837 = vmatmul.mubr.bf16.gmra.mrb[48].mxu1 %v2049_v33  ;;  %v939_v33 = vmul.f32 0.2, %v907_v25 }
 0x21a   :  { %844 = vmatprep.mubr.bf16.mxu1 %v2050_v34 }
 0x221   :  { %845 = vmatmul.mubr.bf16.gmra.mrb[52].mxu1 %v2052_v35 }
 0x222   :  { %852 = vmatprep.mubr.bf16.mxu1 %v2053_v36 }
 0x229   :  { %853 = vmatmul.mubr.bf16.gmra.mrb[56].mxu1 %v2055_v37 }
 0x22a   :  { %860 = vmatprep.mubr.bf16.mxu1 %v2056_v38 }
 0x231   :  { %861 = vmatmul.mubr.bf16.gmra.mrb[60].mxu1 %v2058_v39  ;;  %v940_v39 = vmul.f32 0.2, %v908_v29 }
 0x28c   :  { %v1616_v41 = vpop.f32.mrb[0].mxu1 }
 0x28d   :  { %v1617_v42 = vpop.f32.mrb[1].mxu1 }
 0x28e   :  { %v1618_v44 = vadd.f32 %v1617_v42, %v1616_v41  ;;  %v1619_v46 = vpop.f32.mrb[2].mxu1  ;;  %v909_v42 = vld [vmem:[#allocation7 + $0x40] sm:$0xff] }
 0x28f   :  { %v1620_v47 = vpop.f32.mrb[3].mxu1 }
 0x290   :  { %v869_v48 = vmul.f32 0.8, %v1618_v44  ;;  %v1621_v49 = vadd.f32 %v1620_v47, %v1619_v46  ;;  %v910_v46 = vld [vmem:[#allocation7 + $0x48] sm:$0xff] }
 0x292   :  { %v965_v51 = vadd.f32 %v933_v45, %v869_v48  ;;  %v870_v52 = vmul.f32 0.8, %v1621_v49 }
 0x294   :  { %v966_v56 = vadd.f32 %v934_v50, %v870_v52  ;;  %v1622_v57 = vpop.f32.mrb[4].mxu1  ;;  %v997_v60 = vmax.f32 %v965_v51, 0.0  ;;  %v941_v50 = vmul.f32 0.2, %v909_v42 }
 0x295   :  { %v1623_v58 = vpop.f32.mrb[5].mxu1 }
 0x296   :  { %v998_v61 = vmax.f32 %v966_v56, 0.0  ;;  %v1624_v62 = vadd.f32 %v1623_v58, %v1622_v57  ;;  %v1625_v0 = vpop.f32.mrb[6].mxu1  ;;  %v942_v57 = vmul.f32 0.2, %v910_v46 }
 0x297   :  { %v1626_v1 = vpop.f32.mrb[7].mxu1 }
 0x298   :  { %v2467_v2 = vpack.c.bf16 %v998_v61, %v997_v60  ;;  %v871_v3 = vmul.f32 0.8, %v1624_v62  ;;  %v1627_v4 = vadd.f32 %v1626_v1, %v1625_v0  ;;  %v911_v60 = vld [vmem:[#allocation7 + $0x50] sm:$0xff]  ;;  %v912_v0 = vld [vmem:[#allocation7 + $0x58] sm:$0xff] }
 0x29a   :  { %v967_v6 = vadd.f32 %v935_v63, %v871_v3  ;;  %v872_v7 = vmul.f32 0.8, %v1627_v4 }
 0x29c   :  { %v968_v9 = vadd.f32 %v936_v5, %v872_v7  ;;  %v1628_v10 = vpop.f32.mrb[8].mxu1  ;;  %v999_v13 = vmax.f32 %v967_v6, 0.0  ;;  %v943_v5 = vmul.f32 0.2, %v911_v60 }
 0x29d   :  { %v1629_v11 = vpop.f32.mrb[9].mxu1 }
 0x29e   :  { %v1000_v14 = vmax.f32 %v968_v9, 0.0  ;;  %v1630_v15 = vadd.f32 %v1629_v11, %v1628_v10  ;;  %v1631_v17 = vpop.f32.mrb[10].mxu1  ;;  %v944_v11 = vmul.f32 0.2, %v912_v0 }
 0x29f   :  { %v1632_v18 = vpop.f32.mrb[11].mxu1 }
 0x2a0   :  { %v2469_v19 = vpack.c.bf16 %v1000_v14, %v999_v13  ;;  %v873_v20 = vmul.f32 0.8, %v1630_v15  ;;  %v1633_v21 = vadd.f32 %v1632_v18, %v1631_v17  ;;  %v913_v14 = vld [vmem:[#allocation7 + $0x60] sm:$0xff]  ;;  %v914_v18 = vld [vmem:[#allocation7 + $0x68] sm:$0xff] }
 0x2a1   :  { %v946_v29 = vmul.f32 0.2, %v914_v18 }
 0x2a2   :  { %v969_v23 = vadd.f32 %v937_v16, %v873_v20  ;;  %v874_v24 = vmul.f32 0.8, %v1633_v21 }
 0x2a4   :  { %v970_v26 = vadd.f32 %v938_v22, %v874_v24  ;;  %v1634_v27 = vpop.f32.mrb[12].mxu1  ;;  %v1001_v30 = vmax.f32 %v969_v23, 0.0  ;;  %v945_v23 = vmul.f32 0.2, %v913_v14 }
 0x2a5   :  { %v1635_v28 = vpop.f32.mrb[13].mxu1 }
 0x2a6   :  { %v1002_v31 = vmax.f32 %v970_v26, 0.0  ;;  %v1636_v32 = vadd.f32 %v1635_v28, %v1634_v27  ;;  %v1637_v34 = vpop.f32.mrb[14].mxu1 }
 0x2a7   :  { %v1638_v35 = vpop.f32.mrb[15].mxu1 }
 0x2a8   :  { %v2471_v36 = vpack.c.bf16 %v1002_v31, %v1001_v30  ;;  %v875_v37 = vmul.f32 0.8, %v1636_v32  ;;  %v1639_v38 = vadd.f32 %v1638_v35, %v1637_v34  ;;  %v915_v32 = vld [vmem:[#allocation7 + $0x70] sm:$0xff] }
 0x2aa   :  { %v971_v40 = vadd.f32 %v939_v33, %v875_v37  ;;  %v876_v41 = vmul.f32 0.8, %v1639_v38  ;;  %v916_v37 = vld [vmem:[#allocation7 + $0x78] sm:$0xff] }
 0x2ac   :  { %v972_v43 = vadd.f32 %v940_v39, %v876_v41  ;;  %v1640_v44 = vpop.f32.mrb[16].mxu1  ;;  %v1003_v47 = vmax.f32 %v971_v40, 0.0  ;;  %v947_v41 = vmul.f32 0.2, %v915_v32 }
 0x2ad   :  { %v1641_v45 = vpop.f32.mrb[17].mxu1 }
 0x2ae   :  { %v1004_v48 = vmax.f32 %v972_v43, 0.0  ;;  %v1642_v49 = vadd.f32 %v1641_v45, %v1640_v44  ;;  %v1643_v51 = vpop.f32.mrb[18].mxu1 }
 0x2af   :  { %v1644_v52 = vpop.f32.mrb[19].mxu1 }
 0x2b0   :  { %v2473_v54 = vpack.c.bf16 %v1004_v48, %v1003_v47  ;;  %v877_v55 = vmul.f32 0.8, %v1642_v49  ;;  %v1645_v56 = vadd.f32 %v1644_v52, %v1643_v51  ;;  %v948_v47 = vmul.f32 0.2, %v916_v37 }
 0x2b2   :  { %v973_v58 = vadd.f32 %v941_v50, %v877_v55  ;;  %v878_v59 = vmul.f32 0.8, %v1645_v56  ;;  %v917_v50 = vld [vmem:[#allocation7 + $0x80] sm:$0xff]  ;;  %v918_v56 = vld [vmem:[#allocation7 + $0x88] sm:$0xff] }
 0x2b3   :  { %v949_v60 = vmul.f32 0.2, %v917_v50 }
 0x2b4   :  { %v974_v61 = vadd.f32 %v942_v57, %v878_v59  ;;  %v1646_v62 = vpop.f32.mrb[20].mxu1  ;;  %v1005_v1 = vmax.f32 %v973_v58, 0.0 }
 0x2b5   :  { %v1647_v63 = vpop.f32.mrb[21].mxu1 }
 0x2b6   :  { %v1006_v3 = vmax.f32 %v974_v61, 0.0  ;;  %v1648_v4 = vadd.f32 %v1647_v63, %v1646_v62  ;;  %v1649_v6 = vpop.f32.mrb[22].mxu1 }
 0x2b7   :  { %v1650_v7 = vpop.f32.mrb[23].mxu1 }
 0x2b8   :  { %v2475_v8 = vpack.c.bf16 %v1006_v3, %v1005_v1  ;;  %v879_v9 = vmul.f32 0.8, %v1648_v4  ;;  %v1651_v10 = vadd.f32 %v1650_v7, %v1649_v6  ;;  %v950_v3 = vmul.f32 0.2, %v918_v56  ;;  %v919_v6 = vld [vmem:[#allocation7 + $0x90] sm:$0xff] }
 0x2ba   :  { %v975_v12 = vadd.f32 %v943_v5, %v879_v9  ;;  %v880_v13 = vmul.f32 0.8, %v1651_v10 }
 0x2bc   :  { %v976_v15 = vadd.f32 %v944_v11, %v880_v13  ;;  %v1652_v16 = vpop.f32.mrb[24].mxu1  ;;  %v1007_v20 = vmax.f32 %v975_v12, 0.0  ;;  %v920_v11 = vld [vmem:[#allocation7 + $0x98] sm:$0xff] }
 0x2bd   :  { %v1653_v17 = vpop.f32.mrb[25].mxu1 }
 0x2be   :  { %v1008_v21 = vmax.f32 %v976_v15, 0.0  ;;  %v1654_v22 = vadd.f32 %v1653_v17, %v1652_v16  ;;  %v1655_v24 = vpop.f32.mrb[26].mxu1  ;;  %v951_v15 = vmul.f32 0.2, %v919_v6 }
 0x2bf   :  { %v1656_v25 = vpop.f32.mrb[27].mxu1 }
 0x2c0   :  { %v2477_v26 = vpack.c.bf16 %v1008_v21, %v1007_v20  ;;  %v881_v27 = vmul.f32 0.8, %v1654_v22  ;;  %v1657_v28 = vadd.f32 %v1656_v25, %v1655_v24  ;;  %v952_v21 = vmul.f32 0.2, %v920_v11  ;;  %v921_v25 = vld [vmem:[#allocation7 + $0xa0] sm:$0xff] }
 0x2c2   :  { %v977_v30 = vadd.f32 %v945_v23, %v881_v27  ;;  %v882_v31 = vmul.f32 0.8, %v1657_v28 }
 0x2c4   :  { %v978_v33 = vadd.f32 %v946_v29, %v882_v31  ;;  %v1658_v34 = vpop.f32.mrb[28].mxu1  ;;  %v1009_v38 = vmax.f32 %v977_v30, 0.0  ;;  %v922_v30 = vld [vmem:[#allocation7 + $0xa8] sm:$0xff] }
 0x2c5   :  { %v1659_v35 = vpop.f32.mrb[29].mxu1 }
 0x2c6   :  { %v1010_v39 = vmax.f32 %v978_v33, 0.0  ;;  %v1660_v40 = vadd.f32 %v1659_v35, %v1658_v34  ;;  %v1661_v42 = vpop.f32.mrb[30].mxu1  ;;  %v953_v34 = vmul.f32 0.2, %v921_v25 }
 0x2c7   :  { %v1662_v43 = vpop.f32.mrb[31].mxu1 }
 0x2c8   :  { %v2479_v44 = vpack.c.bf16 %v1010_v39, %v1009_v38  ;;  %v883_v45 = vmul.f32 0.8, %v1660_v40  ;;  %v1663_v46 = vadd.f32 %v1662_v43, %v1661_v42  ;;  %v954_v40 = vmul.f32 0.2, %v922_v30 }
 0x2ca   :  { %v979_v48 = vadd.f32 %v947_v41, %v883_v45  ;;  %v884_v49 = vmul.f32 0.8, %v1663_v46 }
 0x2cc   :  { %v980_v51 = vadd.f32 %v948_v47, %v884_v49  ;;  %v1664_v52 = vpop.f32.mrb[32].mxu1  ;;  %v1011_v57 = vmax.f32 %v979_v48, 0.0  ;;  %v924_v48 = vld [vmem:[#allocation7 + $0xb8] sm:$0xff] }
 0x2cd   :  { %v1665_v55 = vpop.f32.mrb[33].mxu1 }
 0x2ce   :  { %v1012_v58 = vmax.f32 %v980_v51, 0.0  ;;  %v1666_v59 = vadd.f32 %v1665_v55, %v1664_v52  ;;  %v1667_v61 = vpop.f32.mrb[34].mxu1 }
 0x2cf   :  { %v1668_v62 = vpop.f32.mrb[35].mxu1 }
 0x2d0   :  { %v2481_v63 = vpack.c.bf16 %v1012_v58, %v1011_v57  ;;  %v885_v0 = vmul.f32 0.8, %v1666_v59  ;;  %v1669_v1 = vadd.f32 %v1668_v62, %v1667_v61  ;;  %v956_v59 = vmul.f32 0.2, %v924_v48 }
 0x2d2   :  { %v981_v4 = vadd.f32 %v949_v60, %v885_v0  ;;  %v886_v5 = vmul.f32 0.8, %v1669_v1 }
 0x2d4   :  { %v982_v7 = vadd.f32 %v950_v3, %v886_v5  ;;  %v1670_v9 = vpop.f32.mrb[36].mxu1  ;;  %v1013_v12 = vmax.f32 %v981_v4, 0.0  ;;  %v926_v4 = vld [vmem:[#allocation7 + $0xc8] sm:$0xff] }
 0x2d5   :  { %v1671_v10 = vpop.f32.mrb[37].mxu1 }
 0x2d6   :  { %v1014_v13 = vmax.f32 %v982_v7, 0.0  ;;  %v1672_v14 = vadd.f32 %v1671_v10, %v1670_v9  ;;  %v1673_v16 = vpop.f32.mrb[38].mxu1 }
 0x2d7   :  { %v1674_v17 = vpop.f32.mrb[39].mxu1 }
 0x2d8   :  { %v887_v18 = vmul.f32 0.8, %v1672_v14  ;;  %v1675_v20 = vadd.f32 %v1674_v17, %v1673_v16  ;;  %v1038_v22 = vpack.c.bf16 %v1014_v13, %v1013_v12  ;;  %v958_v14 = vmul.f32 0.2, %v926_v4 }
 0x2da   :  { %v983_v23 = vadd.f32 %v951_v15, %v887_v18  ;;  %v888_v24 = vmul.f32 0.8, %v1675_v20  ;;  %1712 = vmatprep.subr.bf16.mxu0 %v1038_v22  ;;  %v928_v22 = vld [vmem:[#allocation7 + $0xd8] sm:$0xff] }
 0x2db   :  { %1713 = vmatpush3.bf16.msra.mxu0 %v2467_v2  ;;  %v923_v2 = vld [vmem:[#allocation7 + $0xb0] sm:$0xff] }
 0x2dc   :  { %v984_v27 = vadd.f32 %v952_v21, %v888_v24  ;;  %v1676_v28 = vpop.f32.mrb[40].mxu1  ;;  %v1015_v31 = vmax.f32 %v983_v23, 0.0  ;;  %v955_v52 = vmul.f32 0.2, %v923_v2 }
 0x2dd   :  { %v1677_v29 = vpop.f32.mrb[41].mxu1 }
 0x2de   :  { %v1016_v32 = vmax.f32 %v984_v27, 0.0  ;;  %v1678_v33 = vadd.f32 %v1677_v29, %v1676_v28  ;;  %v1679_v35 = vpop.f32.mrb[42].mxu1 }
 0x2df   :  { %v1680_v37 = vpop.f32.mrb[43].mxu1 }
 0x2e0   :  { %v889_v38 = vmul.f32 0.8, %v1678_v33  ;;  %v1681_v39 = vadd.f32 %v1680_v37, %v1679_v35  ;;  %v1039_v41 = vpack.c.bf16 %v1016_v32, %v1015_v31  ;;  %v960_v32 = vmul.f32 0.2, %v928_v22 }
 0x2e1   :  { %v2272_v22 = vmov 0.0|0.0  }
 0x2e2   :  { %v985_v42 = vadd.f32 %v953_v34, %v889_v38  ;;  %v890_v43 = vmul.f32 0.8, %v1681_v39  ;;  %1714 = vmatprep.subr.bf16.mxu0 %v1039_v41  ;;  %1922 = vmatprep.subr.bf16.mxu1 %v2272_v22 }
 0x2e3   :  { %1715 = vmatpush3.bf16.msra.mxu0 %v2469_v19  ;;  %v925_v19 = vld [vmem:[#allocation7 + $0xc0] sm:$0xff] }
 0x2e4   :  { %v986_v45 = vadd.f32 %v954_v40, %v890_v43  ;;  %v1682_v46 = vpop.f32.mrb[44].mxu1  ;;  %v1017_v49 = vmax.f32 %v985_v42, 0.0  ;;  %v957_v9 = vmul.f32 0.2, %v925_v19  ;;  %v930_v40 = vld [vmem:[#allocation7 + $0xe8] sm:$0xff] }
 0x2e5   :  { %v1683_v47 = vpop.f32.mrb[45].mxu1 }
 0x2e6   :  { %v1018_v50 = vmax.f32 %v986_v45, 0.0  ;;  %v1684_v51 = vadd.f32 %v1683_v47, %v1682_v46  ;;  %v1685_v55 = vpop.f32.mrb[46].mxu1 }
 0x2e7   :  { %v1686_v56 = vpop.f32.mrb[47].mxu1 }
 0x2e8   :  { %v891_v57 = vmul.f32 0.8, %v1684_v51  ;;  %v1687_v58 = vadd.f32 %v1686_v56, %v1685_v55  ;;  %v1040_v60 = vpack.c.bf16 %v1018_v50, %v1017_v49  ;;  %v962_v49 = vmul.f32 0.2, %v930_v40  ;;  %v1219_v40 = vld [vmem:[#allocation11 + $0x68] sm:$0xff] }
 0x2ea   :  { %v987_v61 = vadd.f32 %v955_v52, %v891_v57  ;;  %v892_v62 = vmul.f32 0.8, %v1687_v58  ;;  %1716 = vmatprep.subr.bf16.mxu0 %v1040_v60  ;;  %v932_v58 = vld [vmem:[#allocation7 + $0xf8] sm:$0xff] }
 0x2eb   :  { %1717 = vmatpush3.bf16.msra.mxu0 %v2471_v36  ;;  %v927_v36 = vld [vmem:[#allocation7 + $0xd0] sm:$0xff]  ;;  %v964_v4 = vmul.f32 0.2, %v932_v58  ;;  %v1228_v58 = vld [vmem:[#allocation13 + $0x20] sm:$0xff] }
 0x2ec   :  { %v988_v0 = vadd.f32 %v956_v59, %v892_v62  ;;  %v1688_v1 = vpop.f32.mrb[48].mxu1  ;;  %v1019_v5 = vmax.f32 %v987_v61, 0.0  ;;  %v959_v27 = vmul.f32 0.2, %v927_v36  ;;  %v2068_v36 = vld [vmem:[#allocation10 + $0x38] sm:$0xff]  }
 0x2ed   :  { %v1689_v3 = vpop.f32.mrb[49].mxu1 }
 0x2ee   :  { %v1020_v6 = vmax.f32 %v988_v0, 0.0  ;;  %v1690_v7 = vadd.f32 %v1689_v3, %v1688_v1  ;;  %v1691_v10 = vpop.f32.mrb[50].mxu1 }
 0x2ef   :  { %v1692_v11 = vpop.f32.mrb[51].mxu1 }
 0x2f0   :  { %v893_v12 = vmul.f32 0.8, %v1690_v7  ;;  %v1693_v13 = vadd.f32 %v1692_v11, %v1691_v10  ;;  %v1041_v15 = vpack.c.bf16 %v1020_v6, %v1019_v5 }
 0x2f2   :  { %v989_v16 = vadd.f32 %v957_v9, %v893_v12  ;;  %v894_v17 = vmul.f32 0.8, %v1693_v13  ;;  %1718 = vmatprep.subr.bf16.mxu0 %v1041_v15  ;;  %v1563_v12 = vcombine.low %v2463_v53, %v2463_v53  ;;  %v2061_v13 = vld [vmem:[#allocation10] sm:$0xff]   ;;  %v2062_v15 = vld [vmem:[#allocation10 + $0x8] sm:$0xff]  }
 0x2f3   :  { %1719 = vmatpush3.bf16.msra.mxu0 %v2473_v54  ;;  %v929_v54 = vld [vmem:[#allocation7 + $0xe0] sm:$0xff] }
 0x2f4   :  { %v990_v18 = vadd.f32 %v958_v14, %v894_v17  ;;  %v1694_v20 = vpop.f32.mrb[52].mxu1  ;;  %v1021_v23 = vmax.f32 %v989_v16, 0.0  ;;  %v961_v2 = vmul.f32 0.2, %v929_v54  ;;  %v2270_v14 = vmov 0.0   ;;  %v2064_v16 = vld [vmem:[#allocation10 + $0x18] sm:$0xff]  }
 0x2f5   :  { %v1695_v21 = vpop.f32.mrb[53].mxu1  ;;  %v2065_v53 = vld [vmem:[#allocation10 + $0x20] sm:$0xff]   ;;  %v2067_v17 = vld [vmem:[#allocation10 + $0x30] sm:$0xff]   ;;  %1879 = vmatprep.mubr.msk.f32.mxu1 %vm2271_vm0, %v2270_v14 }
 0x2f6   :  { %v1022_v24 = vmax.f32 %v990_v18, 0.0  ;;  %v1696_v25 = vadd.f32 %v1695_v21, %v1694_v20  ;;  %v1697_v28 = vpop.f32.mrb[54].mxu1  ;;  %v1206_v18 = vld [vmem:[#allocation11] sm:$0xff]  ;;  %v1207_v20 = vld [vmem:[#allocation11 + $0x8] sm:$0xff]  ;;  %v1208_v21 = vld [vmem:[#allocation11 + $0x10] sm:$0xff] }
 0x2f7   :  { %v1698_v29 = vpop.f32.mrb[55].mxu1  ;;  %v1216_v54 = vld [vmem:[#allocation11 + $0x50] sm:$0xff] }
 0x2f8   :  { %v895_v30 = vmul.f32 0.8, %v1696_v25  ;;  %v1699_v31 = vadd.f32 %v1698_v29, %v1697_v28  ;;  %v1042_v33 = vpack.c.bf16 %v1022_v24, %v1021_v23  ;;  %v1923_v23 = vpack.c.bf16 %v1207_v20, %v1206_v18  ;;  %v1209_v24 = vld [vmem:[#allocation11 + $0x18] sm:$0xff]  ;;  %v1211_v28 = vld [vmem:[#allocation11 + $0x28] sm:$0xff] }
 0x2f9   :  { %v1926_v25 = vpack.c.bf16 %v1209_v24, %v1208_v21  ;;  %v1323_v24 = vlaneseq }
 0x2fa   :  { %v991_v34 = vadd.f32 %v959_v27, %v895_v30  ;;  %v896_v35 = vmul.f32 0.8, %v1699_v31  ;;  %1720 = vmatprep.subr.bf16.mxu0 %v1042_v33  ;;  %1924 = vmatpush3.bf16.msra.mxu1 %v1923_v23  ;;  %v1210_v27 = vld [vmem:[#allocation11 + $0x20] sm:$0xff]  ;;  %v1212_v30 = vld [vmem:[#allocation11 + $0x30] sm:$0xff]  ;;  %v1213_v31 = vld [vmem:[#allocation11 + $0x38] sm:$0xff] }
 0x2fb   :  { %1721 = vmatpush3.bf16.msra.mxu0 %v2475_v8  ;;  %v931_v8 = vld [vmem:[#allocation7 + $0xf0] sm:$0xff]  ;;  %1925 = vmatprep.subr.bf16.mxu1 %v2272_v22  ;;  %v1929_v29 = vpack.c.bf16 %v1211_v28, %v1210_v27  ;;  %v1214_v33 = vld [vmem:[#allocation11 + $0x40] sm:$0xff] }
 0x2fc   :  { %v992_v37 = vadd.f32 %v960_v32, %v896_v35  ;;  %v1700_v38 = vpop.f32.mrb[56].mxu1  ;;  %v1023_v41 = vmax.f32 %v991_v34, 0.0  ;;  %v963_v62 = vmul.f32 0.2, %v931_v8  ;;  %v1932_v32 = vpack.c.bf16 %v1213_v31, %v1212_v30  ;;  %v1215_v34 = vld [vmem:[#allocation11 + $0x48] sm:$0xff] }
 0x2fd   :  { %v1701_v39 = vpop.f32.mrb[57].mxu1  ;;  %v1935_v35 = vpack.c.bf16 %v1215_v34, %v1214_v33  ;;  %v1573_v27 = vld [vmem:[%s2570_s11] ss:$0 sm:$0xff]  ;;  %s2274_s11 = smov [#allocation14]  }
 0x2fe   :  { %v1024_v42 = vmax.f32 %v992_v37, 0.0  ;;  %v1702_v43 = vadd.f32 %v1701_v39, %v1700_v38  ;;  %v1703_v45 = vpop.f32.mrb[58].mxu1  ;;  %1927 = vmatpush3.bf16.msra.mxu1 %v1926_v25  ;;  %v1217_v37 = vld [vmem:[#allocation11 + $0x58] sm:$0xff]  ;;  %v1218_v39 = vld [vmem:[#allocation11 + $0x60] sm:$0xff]  ;;  %v1324_v25 = vshrl.u32 %v1323_v24, 7  ;;  %s1495_s3 = sshll.u32 %s2274_s11, 4  ;;  %s1496_s3 = int_to_ptr.vmem [resolvable:$true] %s1495_s3 }
 0x2ff   :  { %v1704_v46 = vpop.f32.mrb[59].mxu1  ;;  %1928 = vmatprep.subr.bf16.mxu1 %v2272_v22  ;;  %v1938_v38 = vpack.c.bf16 %v1217_v37, %v1216_v54  ;;  %s2227_s15 = scalar_lea.vmem %s1496_s3, 128  ;;  %p2232_p1 = scmp.lt.s32.totalorder %s1496_s3, %s1496_s3 }
 0x300   :  { %v897_v47 = vmul.f32 0.8, %v1702_v43  ;;  %v1705_v48 = vadd.f32 %v1704_v46, %v1703_v45  ;;  %v1043_v50 = vpack.c.bf16 %v1024_v42, %v1023_v41  ;;  %v1941_v41 = vpack.c.bf16 %v1219_v40, %v1218_v39  ;;  %v1220_v42 = vld [vmem:[#allocation11 + $0x70] sm:$0xff]  ;;  %v1221_v43 = vld [vmem:[#allocation11 + $0x78] sm:$0xff]  ;;  %v1224_v46 = vld [vmem:[#allocation13] sm:$0xff]  ;;  %p2228_p0 = scmp.ne.s32.totalorder %s1496_s3, %s2227_s15  ;;  %p2233_p2 = scmp.lt.s32.totalorder %s2227_s15, %s2227_s15 }
 0x302   :  { %v993_v51 = vadd.f32 %v961_v2, %v897_v47  ;;  %v898_v52 = vmul.f32 0.8, %v1705_v48  ;;  %1722 = vmatprep.subr.bf16.mxu0 %v1043_v50  ;;  %1930 = vmatpush3.bf16.msra.mxu1 %v1929_v29  ;;  %v1944_v2 = vpack.c.bf16 %v1221_v43, %v1220_v42  ;;  %v1225_v47 = vld [vmem:[#allocation13 + $0x8] sm:$0xff]  ;;  %v1325_v29 = vsub.s32 0, %v1324_v25  ;;  %p2234_p3 = por %p2233_p2, %p2232_p1 }
 0x303   :  { %1723 = vmatpush3.bf16.msra.mxu0 %v2477_v26  ;;  %1931 = vmatprep.subr.bf16.mxu1 %v2272_v22 }
 0x304   :  { %v994_v55 = vadd.f32 %v962_v49, %v898_v52  ;;  %v1706_v56 = vpop.f32.mrb[60].mxu1  ;;  %v1025_v59 = vmax.f32 %v993_v51, 0.0  ;;  %v1947_v52 = vpack.c.bf16 %v1225_v47, %v1224_v46  ;;  %p2235_p4 = pnand %p2234_p3, %p2228_p0 }
 0x305   :  { %v1707_v57 = vpop.f32.mrb[61].mxu1 }
 0x306   :  { %v1026_v60 = vmax.f32 %v994_v55, 0.0  ;;  %v1708_v61 = vadd.f32 %v1707_v57, %v1706_v56  ;;  %v1709_v19 = vpop.f32.mrb[62].mxu1  ;;  %1933 = vmatpush3.bf16.msra.mxu1 %v1932_v32  ;;  %v1226_v55 = vld [vmem:[#allocation13 + $0x10] sm:$0xff]  ;;  %v1227_v56 = vld [vmem:[#allocation13 + $0x18] sm:$0xff] }
 0x307   :  { %v1710_v0 = vpop.f32.mrb[63].mxu1  ;;  %1934 = vmatprep.subr.bf16.mxu1 %v2272_v22  ;;  %v1950_v57 = vpack.c.bf16 %v1227_v56, %v1226_v55 }
 0x308   :  { %v899_v1 = vmul.f32 0.8, %v1708_v61  ;;  %v1711_v3 = vadd.f32 %v1710_v0, %v1709_v19  ;;  %v1044_v5 = vpack.c.bf16 %v1026_v60, %v1025_v59  ;;  %v1229_v59 = vld [vmem:[#allocation13 + $0x28] sm:$0xff]  ;;  %v1230_v61 = vld [vmem:[#allocation13 + $0x30] sm:$0xff]  ;;  %v1232_v0 = vld [vmem:[#allocation13 + $0x40] sm:$0xff] }
 0x309   :  { %v1953_v60 = vpack.c.bf16 %v1229_v59, %v1228_v58 }
 0x30a   :  { %v995_v6 = vadd.f32 %v963_v62, %v899_v1  ;;  %v900_v7 = vmul.f32 0.8, %v1711_v3  ;;  %1724 = vmatprep.subr.bf16.mxu0 %v1044_v5  ;;  %1936 = vmatpush3.bf16.msra.mxu1 %v1935_v35  ;;  %v1231_v62 = vld [vmem:[#allocation13 + $0x38] sm:$0xff]  ;;  %v1233_v1 = vld [vmem:[#allocation13 + $0x48] sm:$0xff] }
 0x30b   :  { %1725 = vmatpush3.bf16.msra.mxu0 %v2479_v44  ;;  %v2063_v44 = vld [vmem:[#allocation10 + $0x10] sm:$0xff]   ;;  %1937 = vmatprep.subr.bf16.mxu1 %v2272_v22  ;;  %v1956_v19 = vpack.c.bf16 %v1231_v62, %v1230_v61  ;;  %v1959_v3 = vpack.c.bf16 %v1233_v1, %v1232_v0  ;;  %v1235_v5 = vld [vmem:[#allocation13 + $0x58] sm:$0xff] }
 0x30c   :  { %v996_v26 = vadd.f32 %v964_v4, %v900_v7  ;;  %v1027_v9 = vmax.f32 %v995_v6, 0.0  ;;  %v1234_v4 = vld [vmem:[#allocation13 + $0x50] sm:$0xff]  ;;  %v1236_v7 = vld [vmem:[#allocation13 + $0x60] sm:$0xff] }
 0x30d   :  { %v1962_v6 = vpack.c.bf16 %v1235_v5, %v1234_v4 }
 0x30e   :  { %v1028_v10 = vmax.f32 %v996_v26, 0.0  ;;  %1939 = vmatpush3.bf16.msra.mxu1 %v1938_v38  ;;  %v1237_v26 = vld [vmem:[#allocation13 + $0x68] sm:$0xff]  ;;  %v1575_v38 = vld [vmem:[%s2573_s14] ss:$0 sm:$0xff] }
 0x30f   :  { %1940 = vmatprep.subr.bf16.mxu1 %v2272_v22 }
 0x310   :  { %v1045_v11 = vpack.c.bf16 %v1028_v10, %v1027_v9  ;;  %v1965_v9 = vpack.c.bf16 %v1237_v26, %v1236_v7  ;;  %v1203_v10 = vld [vmem:[%s2566_s7] sm:$0x1] }
 0x312   :  { %1726 = vmatprep.subr.bf16.mxu0 %v1045_v11  ;;  %1942 = vmatpush3.bf16.msra.mxu1 %v1941_v41  ;;  %v1238_v11 = vld [vmem:[#allocation13 + $0x70] sm:$0xff] }
 0x313   :  { %1727 = vmatpush3.bf16.msra.mxu0 %v2481_v63  ;;  %v2066_v63 = vld [vmem:[#allocation10 + $0x28] sm:$0xff]   ;;  %1943 = vmatprep.subr.bf16.mxu1 %v2272_v22 }
 0x314   :  { %1827 = vmatprep.subr.bf16.mxu0 %v2270_v14 }
 0x316   :  { %1086 = vmatmul.mubr.bf16.vlgmr.msra.gmra.mrb[32].mxu0 %v1563_v12  ;;  %1945 = vmatpush3.bf16.msra.mxu1 %v1944_v2  ;;  %v1239_v12 = vld [vmem:[#allocation13 + $0x78] sm:$0xff] }
 0x317   :  { %1828 = vmatpush3.bf16.msra.mxu0 %v2061_v13  ;;  %1843 = vmatprep.mubr.msk.bf16.mxu0 %vm2271_vm0, %v2270_v14  ;;  %v1223_v13 = vld [vmem:[%s2571_s12] sm:$0xff] }
 0x318   :  { %1829 = vmatprep.subr.bf16.mxu0 %v2270_v14  ;;  %1882 = vmatprep.subr.mxu1 %v2270_v14 }
 0x319   :  { %1880 = vmatmul.mubr.f32.vlgmr.msra.gmra.mrb[64].mxu1 %v1203_v10 }
 0x31a   :  { %1884 = vmatprep.mubr.msk.f32.mxu1 %vm2271_vm0, %v2270_v14  ;;  %1883 = vmatpush3.msra.mxu1 %v1223_v13 }
 0x31b   :  { %1830 = vmatpush3.bf16.msra.mxu0 %v2062_v15  ;;  %v1968_v15 = vpack.c.bf16 %v1239_v12, %v1238_v11 }
 0x31c   :  { %1831 = vmatprep.subr.bf16.mxu0 %v2270_v14 }
 0x31f   :  { %1832 = vmatpush3.bf16.msra.mxu0 %v2063_v44  ;;  %v1205_v44 = vld [vmem:[%s2568_s9] sm:$0xff] }
 0x320   :  { %1833 = vmatprep.subr.bf16.mxu0 %v2270_v14  ;;  %1885 = vmatmul.mubr.msk.f32.vlgmr.msra.gmra.mrb[66].mxu1 %vm1328_vm1, %v1205_v44 }
 0x323   :  { %1834 = vmatpush3.bf16.msra.mxu0 %v2064_v16  ;;  %v1204_v16 = vld [vmem:[%s2567_s8] sm:$0xff] }
 0x324   :  { %1835 = vmatprep.subr.bf16.mxu0 %v2270_v14 }
 0x327   :  { %1836 = vmatpush3.bf16.msra.mxu0 %v2065_v53  ;;  %v1199_v53 = vld [vmem:[%s2563_s4] sm:$0xff] }
 0x328   :  { %1837 = vmatprep.subr.bf16.mxu0 %v2270_v14 }
 0x32b   :  { %1838 = vmatpush3.bf16.msra.mxu0 %v2066_v63  ;;  %v1200_v63 = vmul.f32 0.2, %v1199_v53 }
 0x32c   :  { %1839 = vmatprep.subr.bf16.mxu0 %v2270_v14 }
 0x32f   :  { %1840 = vmatpush3.bf16.msra.mxu0 %v2067_v17 }
 0x330   :  { %1841 = vmatprep.subr.bf16.mxu0 %v2270_v14 }
 0x333   :  { %1842 = vmatpush3.bf16.msra.mxu0 %v2068_v36 }
 0x334   :  { %1946 = vmatprep.subr.bf16.mxu0 %v2272_v22 }
 0x3e9   :  { %v1728_v45 = vpop.f32.mrb[32].mxu0 }
 0x3ea   :  { %v1729_v48 = vpop.f32.mrb[33].mxu0 }
 0x3eb   :  { %v1730_v49 = vadd.f32 %v1729_v48, %v1728_v45  ;;  %v1731_v50 = vpop.f32.mrb[34].mxu0 }
 0x3ec   :  { %v1732_v51 = vpop.f32.mrb[35].mxu0  ;;  %v1307_v31 = vpop.f32.mrb[64].mxu1 }
 0x3ed   :  { %v1093_v8 = vpack.c.bf16 %v1730_v49, %v1730_v49  ;;  %v1326_v32 = vrot.slane %v1307_v31, %v1325_v29  ;;  %v1881_v33 = vpop.f32.mrb[65].mxu1 }
 0x3ef   :  { %1844 = vmatmul.mubr.bf16.vlgmr.msra.gmra.mrb[36].mxu0 %v1093_v8 }
 0x3f0   :  { %1948 = vmatpush3.bf16.msra.mxu0 %v1947_v52  ;;  %1919 = vmatprep.mubr.msk.f32.mxu0 %vm2271_vm0, %v2270_v14  ;;  %v2273_v14 = vmov 0  }
 0x3f1   :  { %1949 = vmatprep.subr.bf16.mxu0 %v2272_v22  ;;  %1986 = vset.pattern.permute.xlu0 %v2273_v14 }
 0x3f2   :  { %1313 = vperm.xlu0 %1986, %v1204_v16  }
 0x3f3   :  { %v1398_v35 = vpop.f32.mrb[66].mxu1 }
 0x3f4   :  { %1951 = vmatpush3.bf16.msra.mxu0 %v1950_v57  ;;  %v1886_v37 = vpop.f32.mrb[67].mxu1 }
 0x3f5   :  { %1952 = vmatprep.subr.bf16.mxu0 %v2272_v22 }
 0x3f8   :  { %1954 = vmatpush3.bf16.msra.mxu0 %v1953_v60 }
 0x3f9   :  { %1955 = vmatprep.subr.bf16.mxu0 %v2272_v22 }
 0x3fc   :  { %1957 = vmatpush3.bf16.msra.mxu0 %v1956_v19 }
 0x3fd   :  { %1958 = vmatprep.subr.bf16.mxu0 %v2272_v22 }
 0x400   :  { %1960 = vmatpush3.bf16.msra.mxu0 %v1959_v3 }
 0x401   :  { %1961 = vmatprep.subr.bf16.mxu0 %v2272_v22 }
 0x404   :  { %1963 = vmatpush3.bf16.msra.mxu0 %v1962_v6 }
 0x405   :  { %1964 = vmatprep.subr.bf16.mxu0 %v2272_v22 }
 0x408   :  { %1966 = vmatpush3.bf16.msra.mxu0 %v1965_v9 }
 0x409   :  { %1967 = vmatprep.subr.bf16.mxu0 %v2272_v22 }
 0x40c   :  { %1969 = vmatpush3.bf16.msra.mxu0 %v1968_v15 }
 0x471   :  { %v1314_v28 = vpop.permute.xlu0 %1313 }
 0x472   :  { %v1322_v30 = vmul.f32 %v1573_v27, %v1314_v28 }
 0x474   :  { %v1327_v34 = vadd.f32 %v1326_v32, %v1322_v30 }
 0x476   :  { %v1402_v54 = vadd.f32 %v1398_v35, %v1327_v34 }
 0x4c2   :  { %v1192_v17 = vpop.f32.mrb[36].mxu0 }
 0x4c3   :  { %v1198_v36 = vmul.f32 0.8, %v1192_v17  ;;  %v1845_v18 = vpop.f32.mrb[37].mxu0 }
 0x4c4   :  { %v1195_v20 = vpop.f32.mrb[38].mxu0 }
 0x4c5   :  { %v1201_v21 = vadd.f32 %v1200_v63, %v1198_v36  ;;  %v1846_v22 = vpop.f32.mrb[39].mxu0 }
 0x4c7   :  { %v1202_v23 = vmax.f32 %v1201_v21, 0.0 }
 0x4c9   :  { %1920 = vmatmul.mubr.f32.vlgmr.msra.gmra.mrb[40].mxu0 %v1202_v23 }
 0x59c   :  { %v1469_v39 = vpop.f32.mrb[40].mxu0 }
 0x59d   :  { %v1473_v40 = vadd.f32 %v1469_v39, %v1402_v54  ;;  %v1921_v41 = vpop.f32.mrb[41].mxu0 }
 0x59f   :  { %v1480_v42 = vadd.f32 %v1575_v38, %v1473_v40 }
 0x5a1   :  { %2069 = vtanh.f32 %v1480_v42 }
 0x5ab   :  { %v2070_v43 = vpop.eup %2069 }
 0x5ac   :  { %v1482_v2 = vmul.f32 %v2070_v43, %v2070_v43 }
 0x5ae   :  { %1483 = vadd.xlane.f32.xlu0 %v1482_v2 }
 0x63b   :  { %v1484_v45 = vpop.xlane.xlu0 %1483 }
 0x63c   :  { %v1485_v46 = vmax.f32 %v1484_v45, 1e-24 }
 0x63e   :  { %2071 = vrsqrt.f32 %v1485_v46 }
 0x648   :  { %v2072_v47 = vpop.eup %2071 }
 0x649   :  { %v1487_v48 = vmul.f32 %v2072_v47, %v2070_v43 }
 0x64b   :  { %1488 = vst [vmem:[#allocation14] sm:$0xff] %v1487_v48 }
 0x64c   :  { %2238 = shalt.err (!%p2235_p4)
}
 0x64d   :  { %s2577_s25 = sld [smem:[#allocation20_spill]] }
 0x653   :  { %s2239_s0 = scalar_lea.hbm %s2577_s25, 128 }
 0x654   :  { %p2240_p5 = scmp.ne.s32.totalorder %s2577_s25, %s2239_s0  ;;  %p2243_p6 = scmp.lt.u32.totalorder %s2239_s0, %s2577_s25 }
 0x656   :  { %p2245_p7 = pnand %p2243_p6, %p2240_p5 }
 0x658   :  { %2248 = shalt.err (!%p2245_p7)
}
 0x659   :  { %1498 = dma.vmem_to_hbm [thread:$0]  %s1496_s3, 128, %s2577_s25, [#allocation4]  }
 0x65a   :  { %2257 = dma.done.wait [#allocation4], 128  }
 0x65b   :  { %2258 = vsyncadd [#allocation4], 4294967168 }
 0x65c   :  { %1502 = vsyncpa [#allocation3], 1 }
 0x65d   :  { %1503 = vsyncpa [#allocation6], 1 }
 0x65e   :  { %1504 = vsyncpa [#allocation9], 1 }
 0x65f   :  { %1505 = vsyncpa [#allocation12], 1 }
 0x660   :  { %1506 = vsyncpa [#allocation4], 1 }

</bundles_post_ra>
